<compile_context>
chip_gen: v7x
topology: tpu7x:2x2x1
jax: 0.10.0
libtpu: 0.0.40
codegen_flags: <defaults>
</compile_context>

<pallas_src>
import functools

import jax
import jax.numpy as jnp
from jax.experimental import pallas as pl
from jax.experimental.pallas import tpu as pltpu


# ----------------------------- kernel ------------------------------------- #

def _layer_norm(x, gamma, beta, eps=1e-5):
    mean = jnp.mean(x, axis=-1, keepdims=True)
    var = jnp.mean((x - mean) ** 2, axis=-1, keepdims=True)
    return (x - mean) * jax.lax.rsqrt(var + eps) * gamma + beta


def encoder_block_kernel(num_heads,
                         x_ref,
                         wqkv_ref, bqkv_ref, wo_ref, bo_ref,
                         w1_ref, b1_ref, w2_ref, b2_ref,
                         g_ref, be_ref,
                         o_ref):
    bb, S, E = x_ref.shape          # bb batches folded into this grid step
    d = E // num_heads
    scale = float(d) ** -0.5

    # Fold batch into rows for all dense layers (leading-dim merge; S % 8 == 0 -> layout-safe).
    x = x_ref[...].reshape(bb * S, E)                       # (bb*S, E)

    # ---- fused QKV projection: one MXU pass ----
    qkv = jnp.dot(x, wqkv_ref[...],
                  preferred_element_type=jnp.float32) + bqkv_ref[...]   # (bb*S, 3E)
    q = (qkv[:, :E] * scale).reshape(bb, S, E)              # pre-scale queries once
    k = qkv[:, E:2 * E].reshape(bb, S, E)
    v = qkv[:, 2 * E:].reshape(bb, S, E)

    # ---- multi-head attention ----
    # Scores for every head, batched over the bb batch rows; stack along the leading axis so
    # the softmax reductions run once over all bb*H score matrices.
    s_list = []
    for h in range(num_heads):
        sl = slice(h * d, (h + 1) * d)
        s_list.append(jnp.einsum('bqd,bkd->bqk', q[:, :, sl], k[:, :, sl],
                                 preferred_element_type=jnp.float32))   # (bb, S, S)
    s = jnp.concatenate(s_list, axis=0)                     # (H*bb, S, S)
    s = s - jnp.max(s, axis=-1, keepdims=True)
    p = jnp.exp(s)
    p = p * pl.reciprocal(jnp.sum(p, axis=-1, keepdims=True), approx=True)

    # Per-head attention output folded directly into the output projection:
    #   attn = sum_h (P_h @ V_h) @ Wo[h*d:(h+1)*d, :]
    # (avoids the 8-piece lane concat of (S, d) head outputs).
    wo = wo_ref[...]                                        # (E, E), loaded once
    attn = jnp.zeros((bb * S, E), jnp.float32)
    for h in range(num_heads):
        sl = slice(h * d, (h + 1) * d)
        o_h = jnp.einsum('bqk,bkd->bqd', p[h * bb:(h + 1) * bb], v[:, :, sl],
                         preferred_element_type=jnp.float32)            # (bb, S, d)
        attn = attn + jnp.dot(o_h.reshape(bb * S, d), wo[sl, :],
                              preferred_element_type=jnp.float32)
    attn = attn + bo_ref[...]

    gamma = g_ref[...]
    beta = be_ref[...]

    # residual + LN (same LayerNorm params for both norms, as in the torch module)
    h1 = _layer_norm(x + attn, gamma, beta)

    # feed-forward: fc1 -> ReLU -> fc2
    ff = jnp.dot(h1, w1_ref[...], preferred_element_type=jnp.float32) + b1_ref[...]
    ff = jnp.maximum(ff, 0.0)
    ff = jnp.dot(ff, w2_ref[...], preferred_element_type=jnp.float32) + b2_ref[...]

    out = _layer_norm(h1 + ff, gamma, beta)
    o_ref[...] = out.reshape(bb, S, E).astype(o_ref.dtype)


# ----------------------------- wrapper ------------------------------------ #

def transformer_encoder_block(x, params, num_heads, batch_block=None):
    """x: (B, S, E) float32. params: dict of kernel-ready (fused / pre-permuted) weights."""
    B, S, E = x.shape
    if batch_block is None:
        batch_block = B                      # fold the whole batch into a single grid step
    assert B % batch_block == 0

    ordered = [params[n] for n in
               ("wqkv", "bqkv", "wo", "bo", "w1", "b1", "w2", "b2", "gamma", "beta")]

    def full_spec(arr):
        nd = arr.ndim
        return pl.BlockSpec(arr.shape, lambda b, _nd=nd: (0,) * _nd)

    in_specs = [pl.BlockSpec((batch_block, S, E), lambda b: (b, 0, 0))]
    in_specs += [full_spec(a) for a in ordered]
    out_specs = pl.BlockSpec((batch_block, S, E), lambda b: (b, 0, 0))

    kernel = functools.partial(encoder_block_kernel, num_heads)
    return pl.pallas_call(
        kernel,
        out_shape=jax.ShapeDtypeStruct((B, S, E), x.dtype),
        grid=(B // batch_block,),
        in_specs=in_specs,
        out_specs=out_specs,
        # batch blocks are fully independent -> "parallel" lets v7x shard them over its 2 TCs
        compiler_params=pltpu.CompilerParams(
            dimension_semantics=("parallel",)),
    )(x, *ordered)


# ---------------------- parameter construction ---------------------------- #

def init_raw_params(key, E, num_heads):
    """Deterministic init matching torch.nn.Linear / LayerNorm shapes.
    Linear weights stored as (in, out) == torch_weight.T."""
    d = E // num_heads

    def linear(k, fan_in, fan_out):
        kw, kb = jax.random.split(k)
        bound = 1.0 / jnp.sqrt(jnp.float32(fan_in))
        W = jax.random.uniform(kw, (fan_in, fan_out), jnp.float32, -bound, bound)
        b = jax.random.uniform(kb, (fan_out,), jnp.float32, -bound, bound)
        return W, b

    ks = jax.random.split(key, 6)
    Wq, bq = linear(ks[0], E, num_heads * d)
    Wk, bk = linear(ks[1], E, num_heads * d)
    Wv, bv = linear(ks[2], E, num_heads * d)
    Wo, bo = linear(ks[3], num_heads * d, E)
    W1, b1 = linear(ks[4], E, 4 * E)
    W2, b2 = linear(ks[5], 4 * E, E)
    gamma = jnp.ones((E,), jnp.float32)
    beta = jnp.zeros((E,), jnp.float32)
    return dict(Wq=Wq, bq=bq, Wk=Wk, bk=bk, Wv=Wv, bv=bv, Wo=Wo, bo=bo,
                W1=W1, b1=b1, W2=W2, b2=b2, gamma=gamma, beta=beta)


def kernelize_params(raw, E, num_heads):
    """Permute Q/K/V projection columns so head i occupies a contiguous block of d columns
    (reproducing torch's reshape(B,S,d,H)[..., i] strided head split), then fuse the three
    projections into a single (E, 3E) weight and (1, 3E) bias."""
    d = E // num_heads
    perm = jnp.array([dd * num_heads + i for i in range(num_heads) for dd in range(d)],
                     dtype=jnp.int32)
    row = lambda v: v.reshape(1, -1)
    wqkv = jnp.concatenate([raw["Wq"][:, perm], raw["Wk"][:, perm], raw["Wv"][:, perm]],
                           axis=1)                               # (E, 3E)
    bqkv = jnp.concatenate([raw["bq"][perm], raw["bk"][perm], raw["bv"][perm]]).reshape(1, -1)
    return dict(
        wqkv=wqkv, bqkv=bqkv,
        wo=raw["Wo"], bo=row(raw["bo"]),
        w1=raw["W1"], b1=row(raw["b1"]),
        w2=raw["W2"], b2=row(raw["b2"]),
        gamma=row(raw["gamma"]), beta=row(raw["beta"]),
    )


# ------------------------- pure-JAX reference ------------------------------ #

def reference_forward(x, raw, num_heads):
    """Literal translation of the torch module's forward (for verification)."""
    B, S, E = x.shape
    d = E // num_heads

    q = x @ raw["Wq"] + raw["bq"]
    k = x @ raw["Wk"] + raw["bk"]
    v = x @ raw["Wv"] + raw["bv"]
    q = q.reshape(B, S, d, num_heads)
    k = k.reshape(B, S, d, num_heads)
    v = v.reshape(B, S, d, num_heads)

    outs = []
    for i in range(num_heads):
        qi, ki, vi = q[..., i], k[..., i], v[..., i]
        energy = jnp.einsum("bsd,btd->bst", qi, ki) * (1.0 / jnp.sqrt(jnp.float32(d)))
        attn = jax.nn.softmax(energy, axis=-1)
        outs.append(jnp.einsum("bst,btd->bsd", attn, vi))
    concat = jnp.concatenate(outs, axis=-1)
    attn_emb = concat @ raw["Wo"] + raw["bo"]

    def ln(y):
        m = y.mean(-1, keepdims=True)
        var = ((y - m) ** 2).mean(-1, keepdims=True)
        return (y - m) / jnp.sqrt(var + 1e-5) * raw["gamma"] + raw["beta"]

    h = ln(x + attn_emb)
    ff = jnp.maximum(h @ raw["W1"] + raw["b1"], 0.0) @ raw["W2"] + raw["b2"]
    return ln(h + ff)


# ------------------------------- main -------------------------------------- #

if __name__ == "__main__":
    B, S, E, H = 2, 8, 32, 8

    key = jax.random.PRNGKey(0)
    kx, kp = jax.random.split(key)
    x = jax.random.normal(kx, (B, S, E), jnp.float32)

    raw = init_raw_params(kp, E, H)
    kparams = kernelize_params(raw, E, H)

    out = transformer_encoder_block(x, kparams, H)
    out = jax.block_until_ready(out)

    ref = reference_forward(x, raw, H)
    assert out.shape == (B, S, E)
    # Everything is f32 except the softmax normalization, which uses the EUP approximate
    # reciprocal (~1e-4-level relative error). 5e-3 is far below any head-permutation /
    # wiring bug (those produce O(1) errors) while leaving margin for the approx recip.
    assert jnp.allclose(out, ref, atol=5e-3, rtol=5e-3), "mismatch vs reference"

    print("KERNEL_OK")
</pallas_src>

<mosaic_0001>
module attributes {stable_mosaic.version = 11 : i64} {
  func.func @encoder_block_kernel(%arg0: i32, %arg1: memref<2x8x32xf32, #tpu.memory_space<vmem>>, %arg2: memref<32x96xf32, #tpu.memory_space<vmem>>, %arg3: memref<1x96xf32, #tpu.memory_space<vmem>>, %arg4: memref<32x32xf32, #tpu.memory_space<vmem>>, %arg5: memref<1x32xf32, #tpu.memory_space<vmem>>, %arg6: memref<32x128xf32, #tpu.memory_space<vmem>>, %arg7: memref<1x128xf32, #tpu.memory_space<vmem>>, %arg8: memref<128x32xf32, #tpu.memory_space<vmem>>, %arg9: memref<1x32xf32, #tpu.memory_space<vmem>>, %arg10: memref<1x32xf32, #tpu.memory_space<vmem>>, %arg11: memref<1x32xf32, #tpu.memory_space<vmem>>, %arg12: memref<2x8x32xf32, #tpu.memory_space<vmem>>) attributes {dimension_semantics = [#tpu.dimension_semantics<parallel>], iteration_bounds = array<i64: 1>, scalar_prefetch = 0 : i64, scratch_operands = 0 : i64, tpu.core_type = #tpu.core_type<tc>, window_params = [{transform_indices = @transform_0, window_bounds = array<i64: 2, 8, 32>}, {pipeline_mode = #tpu.pipeline_mode<synchronous>, transform_indices = @transform_1, window_bounds = array<i64: 32, 96>}, {pipeline_mode = #tpu.pipeline_mode<synchronous>, transform_indices = @transform_2, window_bounds = array<i64: 1, 96>}, {pipeline_mode = #tpu.pipeline_mode<synchronous>, transform_indices = @transform_3, window_bounds = array<i64: 32, 32>}, {pipeline_mode = #tpu.pipeline_mode<synchronous>, transform_indices = @transform_4, window_bounds = array<i64: 1, 32>}, {pipeline_mode = #tpu.pipeline_mode<synchronous>, transform_indices = @transform_5, window_bounds = array<i64: 32, 128>}, {pipeline_mode = #tpu.pipeline_mode<synchronous>, transform_indices = @transform_6, window_bounds = array<i64: 1, 128>}, {pipeline_mode = #tpu.pipeline_mode<synchronous>, transform_indices = @transform_7, window_bounds = array<i64: 128, 32>}, {pipeline_mode = #tpu.pipeline_mode<synchronous>, transform_indices = @transform_8, window_bounds = array<i64: 1, 32>}, {pipeline_mode = #tpu.pipeline_mode<synchronous>, transform_indices = @transform_9, window_bounds = array<i64: 1, 32>}, {pipeline_mode = #tpu.pipeline_mode<synchronous>, transform_indices = @transform_10, window_bounds = array<i64: 1, 32>}, {transform_indices = @transform_11, window_bounds = array<i64: 2, 8, 32>}]} {
    %c0 = arith.constant 0 : index
    %c0_0 = arith.constant 0 : index
    %c0_1 = arith.constant 0 : index
    %0 = vector.load %arg1[%c0, %c0_0, %c0_1] : memref<2x8x32xf32, #tpu.memory_space<vmem>>, vector<2x8x32xf32>
    %1 = vector.shape_cast %0 : vector<2x8x32xf32> to vector<16x32xf32>
    %c0_2 = arith.constant 0 : index
    %c0_3 = arith.constant 0 : index
    %2 = vector.load %arg2[%c0_2, %c0_3] : memref<32x96xf32, #tpu.memory_space<vmem>>, vector<32x96xf32>
    %cst = arith.constant dense<0.000000e+00> : vector<16x96xf32>
    %3 = tpu.matmul %1, %2, %cst {dimension_numbers = #tpu.dot_dimension_numbers<[1], [0], [0], [1], [0, 0, 1, 1], [], []>} : vector<16x32xf32>, vector<32x96xf32>, vector<16x96xf32> -> vector<16x96xf32>
    %c0_4 = arith.constant 0 : index
    %c0_5 = arith.constant 0 : index
    %4 = vector.load %arg3[%c0_4, %c0_5] : memref<1x96xf32, #tpu.memory_space<vmem>>, vector<1x96xf32>
    %5 = vector.broadcast %4 : vector<1x96xf32> to vector<16x96xf32>
    %6 = arith.addf %3, %5 : vector<16x96xf32>
    %7 = vector.extract_strided_slice %6 {offsets = [0, 0], sizes = [16, 32], strides = [1, 1]} : vector<16x96xf32> to vector<16x32xf32>
    %cst_6 = arith.constant 5.000000e-01 : f32
    %8 = vector.broadcast %cst_6 : f32 to vector<16x32xf32>
    %9 = arith.mulf %7, %8 : vector<16x32xf32>
    %10 = vector.shape_cast %9 : vector<16x32xf32> to vector<2x8x32xf32>
    %11 = vector.extract_strided_slice %6 {offsets = [0, 32], sizes = [16, 32], strides = [1, 1]} : vector<16x96xf32> to vector<16x32xf32>
    %12 = vector.shape_cast %11 : vector<16x32xf32> to vector<2x8x32xf32>
    %13 = vector.extract_strided_slice %6 {offsets = [0, 64], sizes = [16, 32], strides = [1, 1]} : vector<16x96xf32> to vector<16x32xf32>
    %14 = vector.shape_cast %13 : vector<16x32xf32> to vector<2x8x32xf32>
    %15 = vector.extract_strided_slice %10 {offsets = [0, 0, 0], sizes = [2, 8, 4], strides = [1, 1, 1]} : vector<2x8x32xf32> to vector<2x8x4xf32>
    %16 = vector.extract_strided_slice %12 {offsets = [0, 0, 0], sizes = [2, 8, 4], strides = [1, 1, 1]} : vector<2x8x32xf32> to vector<2x8x4xf32>
    "tpu.trace_start"() <{level = 10 : i32, message = "bqd,bkd->bqk"}> : () -> ()
    %cst_7 = arith.constant dense<0.000000e+00> : vector<2x8x8xf32>
    %17 = tpu.matmul %15, %16, %cst_7 {dimension_numbers = #tpu.dot_dimension_numbers<[2], [2], [1], [1], [0, 0, 0, 1, 1, 1], [0], [0]>} : vector<2x8x4xf32>, vector<2x8x4xf32>, vector<2x8x8xf32> -> vector<2x8x8xf32>
    "tpu.trace_stop"() : () -> ()
    %18 = vector.extract_strided_slice %10 {offsets = [0, 0, 4], sizes = [2, 8, 4], strides = [1, 1, 1]} : vector<2x8x32xf32> to vector<2x8x4xf32>
    %19 = vector.extract_strided_slice %12 {offsets = [0, 0, 4], sizes = [2, 8, 4], strides = [1, 1, 1]} : vector<2x8x32xf32> to vector<2x8x4xf32>
    "tpu.trace_start"() <{level = 10 : i32, message = "bqd,bkd->bqk"}> : () -> ()
    %cst_8 = arith.constant dense<0.000000e+00> : vector<2x8x8xf32>
    %20 = tpu.matmul %18, %19, %cst_8 {dimension_numbers = #tpu.dot_dimension_numbers<[2], [2], [1], [1], [0, 0, 0, 1, 1, 1], [0], [0]>} : vector<2x8x4xf32>, vector<2x8x4xf32>, vector<2x8x8xf32> -> vector<2x8x8xf32>
    "tpu.trace_stop"() : () -> ()
    %21 = vector.extract_strided_slice %10 {offsets = [0, 0, 8], sizes = [2, 8, 4], strides = [1, 1, 1]} : vector<2x8x32xf32> to vector<2x8x4xf32>
    %22 = vector.extract_strided_slice %12 {offsets = [0, 0, 8], sizes = [2, 8, 4], strides = [1, 1, 1]} : vector<2x8x32xf32> to vector<2x8x4xf32>
    "tpu.trace_start"() <{level = 10 : i32, message = "bqd,bkd->bqk"}> : () -> ()
    %cst_9 = arith.constant dense<0.000000e+00> : vector<2x8x8xf32>
    %23 = tpu.matmul %21, %22, %cst_9 {dimension_numbers = #tpu.dot_dimension_numbers<[2], [2], [1], [1], [0, 0, 0, 1, 1, 1], [0], [0]>} : vector<2x8x4xf32>, vector<2x8x4xf32>, vector<2x8x8xf32> -> vector<2x8x8xf32>
    "tpu.trace_stop"() : () -> ()
    %24 = vector.extract_strided_slice %10 {offsets = [0, 0, 12], sizes = [2, 8, 4], strides = [1, 1, 1]} : vector<2x8x32xf32> to vector<2x8x4xf32>
    %25 = vector.extract_strided_slice %12 {offsets = [0, 0, 12], sizes = [2, 8, 4], strides = [1, 1, 1]} : vector<2x8x32xf32> to vector<2x8x4xf32>
    "tpu.trace_start"() <{level = 10 : i32, message = "bqd,bkd->bqk"}> : () -> ()
    %cst_10 = arith.constant dense<0.000000e+00> : vector<2x8x8xf32>
    %26 = tpu.matmul %24, %25, %cst_10 {dimension_numbers = #tpu.dot_dimension_numbers<[2], [2], [1], [1], [0, 0, 0, 1, 1, 1], [0], [0]>} : vector<2x8x4xf32>, vector<2x8x4xf32>, vector<2x8x8xf32> -> vector<2x8x8xf32>
    "tpu.trace_stop"() : () -> ()
    %27 = vector.extract_strided_slice %10 {offsets = [0, 0, 16], sizes = [2, 8, 4], strides = [1, 1, 1]} : vector<2x8x32xf32> to vector<2x8x4xf32>
    %28 = vector.extract_strided_slice %12 {offsets = [0, 0, 16], sizes = [2, 8, 4], strides = [1, 1, 1]} : vector<2x8x32xf32> to vector<2x8x4xf32>
    "tpu.trace_start"() <{level = 10 : i32, message = "bqd,bkd->bqk"}> : () -> ()
    %cst_11 = arith.constant dense<0.000000e+00> : vector<2x8x8xf32>
    %29 = tpu.matmul %27, %28, %cst_11 {dimension_numbers = #tpu.dot_dimension_numbers<[2], [2], [1], [1], [0, 0, 0, 1, 1, 1], [0], [0]>} : vector<2x8x4xf32>, vector<2x8x4xf32>, vector<2x8x8xf32> -> vector<2x8x8xf32>
    "tpu.trace_stop"() : () -> ()
    %30 = vector.extract_strided_slice %10 {offsets = [0, 0, 20], sizes = [2, 8, 4], strides = [1, 1, 1]} : vector<2x8x32xf32> to vector<2x8x4xf32>
    %31 = vector.extract_strided_slice %12 {offsets = [0, 0, 20], sizes = [2, 8, 4], strides = [1, 1, 1]} : vector<2x8x32xf32> to vector<2x8x4xf32>
    "tpu.trace_start"() <{level = 10 : i32, message = "bqd,bkd->bqk"}> : () -> ()
    %cst_12 = arith.constant dense<0.000000e+00> : vector<2x8x8xf32>
    %32 = tpu.matmul %30, %31, %cst_12 {dimension_numbers = #tpu.dot_dimension_numbers<[2], [2], [1], [1], [0, 0, 0, 1, 1, 1], [0], [0]>} : vector<2x8x4xf32>, vector<2x8x4xf32>, vector<2x8x8xf32> -> vector<2x8x8xf32>
    "tpu.trace_stop"() : () -> ()
    %33 = vector.extract_strided_slice %10 {offsets = [0, 0, 24], sizes = [2, 8, 4], strides = [1, 1, 1]} : vector<2x8x32xf32> to vector<2x8x4xf32>
    %34 = vector.extract_strided_slice %12 {offsets = [0, 0, 24], sizes = [2, 8, 4], strides = [1, 1, 1]} : vector<2x8x32xf32> to vector<2x8x4xf32>
    "tpu.trace_start"() <{level = 10 : i32, message = "bqd,bkd->bqk"}> : () -> ()
    %cst_13 = arith.constant dense<0.000000e+00> : vector<2x8x8xf32>
    %35 = tpu.matmul %33, %34, %cst_13 {dimension_numbers = #tpu.dot_dimension_numbers<[2], [2], [1], [1], [0, 0, 0, 1, 1, 1], [0], [0]>} : vector<2x8x4xf32>, vector<2x8x4xf32>, vector<2x8x8xf32> -> vector<2x8x8xf32>
    "tpu.trace_stop"() : () -> ()
    %36 = vector.extract_strided_slice %10 {offsets = [0, 0, 28], sizes = [2, 8, 4], strides = [1, 1, 1]} : vector<2x8x32xf32> to vector<2x8x4xf32>
    %37 = vector.extract_strided_slice %12 {offsets = [0, 0, 28], sizes = [2, 8, 4], strides = [1, 1, 1]} : vector<2x8x32xf32> to vector<2x8x4xf32>
    "tpu.trace_start"() <{level = 10 : i32, message = "bqd,bkd->bqk"}> : () -> ()
    %cst_14 = arith.constant dense<0.000000e+00> : vector<2x8x8xf32>
    %38 = tpu.matmul %36, %37, %cst_14 {dimension_numbers = #tpu.dot_dimension_numbers<[2], [2], [1], [1], [0, 0, 0, 1, 1, 1], [0], [0]>} : vector<2x8x4xf32>, vector<2x8x4xf32>, vector<2x8x8xf32> -> vector<2x8x8xf32>
    "tpu.trace_stop"() : () -> ()
    %39 = tpu.concatenate %17, %20, %23, %26, %29, %32, %35, %38 in 0 : vector<2x8x8xf32>, vector<2x8x8xf32>, vector<2x8x8xf32>, vector<2x8x8xf32>, vector<2x8x8xf32>, vector<2x8x8xf32>, vector<2x8x8xf32>, vector<2x8x8xf32> -> vector<16x8x8xf32>
    %cst_15 = arith.constant dense<0xFF800000> : vector<16x8xf32>
    %40 = vector.multi_reduction <maximumf>, %39, %cst_15 [2] : vector<16x8x8xf32> to vector<16x8xf32>
    %41 = vector.shape_cast %40 : vector<16x8xf32> to vector<16x8x1xf32>
    %42 = vector.broadcast %41 : vector<16x8x1xf32> to vector<16x8x8xf32>
    %43 = arith.subf %39, %42 : vector<16x8x8xf32>
    %44 = math.exp %43 : vector<16x8x8xf32>
    %cst_16 = arith.constant dense<0.000000e+00> : vector<16x8xf32>
    %45 = vector.multi_reduction <add>, %44, %cst_16 [2] : vector<16x8x8xf32> to vector<16x8xf32>
    %46 = vector.shape_cast %45 : vector<16x8xf32> to vector<16x8x1xf32>
    %47 = tpu.reciprocal %46 {approx = true} : vector<16x8x1xf32> -> vector<16x8x1xf32>
    %48 = vector.broadcast %47 : vector<16x8x1xf32> to vector<16x8x8xf32>
    %49 = arith.mulf %44, %48 : vector<16x8x8xf32>
    %c0_17 = arith.constant 0 : index
    %c0_18 = arith.constant 0 : index
    %50 = vector.load %arg4[%c0_17, %c0_18] : memref<32x32xf32, #tpu.memory_space<vmem>>, vector<32x32xf32>
    %cst_19 = arith.constant 0.000000e+00 : f32
    %51 = vector.broadcast %cst_19 : f32 to vector<16x32xf32>
    %52 = vector.extract_strided_slice %49 {offsets = [0, 0, 0], sizes = [2, 8, 8], strides = [1, 1, 1]} : vector<16x8x8xf32> to vector<2x8x8xf32>
    %53 = vector.extract_strided_slice %14 {offsets = [0, 0, 0], sizes = [2, 8, 4], strides = [1, 1, 1]} : vector<2x8x32xf32> to vector<2x8x4xf32>
    "tpu.trace_start"() <{level = 10 : i32, message = "bqk,bkd->bqd"}> : () -> ()
    %cst_20 = arith.constant dense<0.000000e+00> : vector<2x8x4xf32>
    %54 = tpu.matmul %52, %53, %cst_20 {dimension_numbers = #tpu.dot_dimension_numbers<[2], [1], [1], [2], [0, 0, 0, 1, 1, 2], [0], [0]>} : vector<2x8x8xf32>, vector<2x8x4xf32>, vector<2x8x4xf32> -> vector<2x8x4xf32>
    "tpu.trace_stop"() : () -> ()
    %55 = vector.shape_cast %54 : vector<2x8x4xf32> to vector<16x4xf32>
    %56 = vector.extract_strided_slice %50 {offsets = [0, 0], sizes = [4, 32], strides = [1, 1]} : vector<32x32xf32> to vector<4x32xf32>
    %cst_21 = arith.constant dense<0.000000e+00> : vector<16x32xf32>
    %57 = tpu.matmul %55, %56, %cst_21 {dimension_numbers = #tpu.dot_dimension_numbers<[1], [0], [0], [1], [0, 0, 1, 1], [], []>} : vector<16x4xf32>, vector<4x32xf32>, vector<16x32xf32> -> vector<16x32xf32>
    %58 = arith.addf %51, %57 : vector<16x32xf32>
    %59 = vector.extract_strided_slice %49 {offsets = [2, 0, 0], sizes = [2, 8, 8], strides = [1, 1, 1]} : vector<16x8x8xf32> to vector<2x8x8xf32>
    %60 = vector.extract_strided_slice %14 {offsets = [0, 0, 4], sizes = [2, 8, 4], strides = [1, 1, 1]} : vector<2x8x32xf32> to vector<2x8x4xf32>
    "tpu.trace_start"() <{level = 10 : i32, message = "bqk,bkd->bqd"}> : () -> ()
    %cst_22 = arith.constant dense<0.000000e+00> : vector<2x8x4xf32>
    %61 = tpu.matmul %59, %60, %cst_22 {dimension_numbers = #tpu.dot_dimension_numbers<[2], [1], [1], [2], [0, 0, 0, 1, 1, 2], [0], [0]>} : vector<2x8x8xf32>, vector<2x8x4xf32>, vector<2x8x4xf32> -> vector<2x8x4xf32>
    "tpu.trace_stop"() : () -> ()
    %62 = vector.shape_cast %61 : vector<2x8x4xf32> to vector<16x4xf32>
    %63 = vector.extract_strided_slice %50 {offsets = [4, 0], sizes = [4, 32], strides = [1, 1]} : vector<32x32xf32> to vector<4x32xf32>
    %cst_23 = arith.constant dense<0.000000e+00> : vector<16x32xf32>
    %64 = tpu.matmul %62, %63, %cst_23 {dimension_numbers = #tpu.dot_dimension_numbers<[1], [0], [0], [1], [0, 0, 1, 1], [], []>} : vector<16x4xf32>, vector<4x32xf32>, vector<16x32xf32> -> vector<16x32xf32>
    %65 = arith.addf %58, %64 : vector<16x32xf32>
    %66 = vector.extract_strided_slice %49 {offsets = [4, 0, 0], sizes = [2, 8, 8], strides = [1, 1, 1]} : vector<16x8x8xf32> to vector<2x8x8xf32>
    %67 = vector.extract_strided_slice %14 {offsets = [0, 0, 8], sizes = [2, 8, 4], strides = [1, 1, 1]} : vector<2x8x32xf32> to vector<2x8x4xf32>
    "tpu.trace_start"() <{level = 10 : i32, message = "bqk,bkd->bqd"}> : () -> ()
    %cst_24 = arith.constant dense<0.000000e+00> : vector<2x8x4xf32>
    %68 = tpu.matmul %66, %67, %cst_24 {dimension_numbers = #tpu.dot_dimension_numbers<[2], [1], [1], [2], [0, 0, 0, 1, 1, 2], [0], [0]>} : vector<2x8x8xf32>, vector<2x8x4xf32>, vector<2x8x4xf32> -> vector<2x8x4xf32>
    "tpu.trace_stop"() : () -> ()
    %69 = vector.shape_cast %68 : vector<2x8x4xf32> to vector<16x4xf32>
    %70 = vector.extract_strided_slice %50 {offsets = [8, 0], sizes = [4, 32], strides = [1, 1]} : vector<32x32xf32> to vector<4x32xf32>
    %cst_25 = arith.constant dense<0.000000e+00> : vector<16x32xf32>
    %71 = tpu.matmul %69, %70, %cst_25 {dimension_numbers = #tpu.dot_dimension_numbers<[1], [0], [0], [1], [0, 0, 1, 1], [], []>} : vector<16x4xf32>, vector<4x32xf32>, vector<16x32xf32> -> vector<16x32xf32>
    %72 = arith.addf %65, %71 : vector<16x32xf32>
    %73 = vector.extract_strided_slice %49 {offsets = [6, 0, 0], sizes = [2, 8, 8], strides = [1, 1, 1]} : vector<16x8x8xf32> to vector<2x8x8xf32>
    %74 = vector.extract_strided_slice %14 {offsets = [0, 0, 12], sizes = [2, 8, 4], strides = [1, 1, 1]} : vector<2x8x32xf32> to vector<2x8x4xf32>
    "tpu.trace_start"() <{level = 10 : i32, message = "bqk,bkd->bqd"}> : () -> ()
    %cst_26 = arith.constant dense<0.000000e+00> : vector<2x8x4xf32>
    %75 = tpu.matmul %73, %74, %cst_26 {dimension_numbers = #tpu.dot_dimension_numbers<[2], [1], [1], [2], [0, 0, 0, 1, 1, 2], [0], [0]>} : vector<2x8x8xf32>, vector<2x8x4xf32>, vector<2x8x4xf32> -> vector<2x8x4xf32>
    "tpu.trace_stop"() : () -> ()
    %76 = vector.shape_cast %75 : vector<2x8x4xf32> to vector<16x4xf32>
    %77 = vector.extract_strided_slice %50 {offsets = [12, 0], sizes = [4, 32], strides = [1, 1]} : vector<32x32xf32> to vector<4x32xf32>
    %cst_27 = arith.constant dense<0.000000e+00> : vector<16x32xf32>
    %78 = tpu.matmul %76, %77, %cst_27 {dimension_numbers = #tpu.dot_dimension_numbers<[1], [0], [0], [1], [0, 0, 1, 1], [], []>} : vector<16x4xf32>, vector<4x32xf32>, vector<16x32xf32> -> vector<16x32xf32>
    %79 = arith.addf %72, %78 : vector<16x32xf32>
    %80 = vector.extract_strided_slice %49 {offsets = [8, 0, 0], sizes = [2, 8, 8], strides = [1, 1, 1]} : vector<16x8x8xf32> to vector<2x8x8xf32>
    %81 = vector.extract_strided_slice %14 {offsets = [0, 0, 16], sizes = [2, 8, 4], strides = [1, 1, 1]} : vector<2x8x32xf32> to vector<2x8x4xf32>
    "tpu.trace_start"() <{level = 10 : i32, message = "bqk,bkd->bqd"}> : () -> ()
    %cst_28 = arith.constant dense<0.000000e+00> : vector<2x8x4xf32>
    %82 = tpu.matmul %80, %81, %cst_28 {dimension_numbers = #tpu.dot_dimension_numbers<[2], [1], [1], [2], [0, 0, 0, 1, 1, 2], [0], [0]>} : vector<2x8x8xf32>, vector<2x8x4xf32>, vector<2x8x4xf32> -> vector<2x8x4xf32>
    "tpu.trace_stop"() : () -> ()
    %83 = vector.shape_cast %82 : vector<2x8x4xf32> to vector<16x4xf32>
    %84 = vector.extract_strided_slice %50 {offsets = [16, 0], sizes = [4, 32], strides = [1, 1]} : vector<32x32xf32> to vector<4x32xf32>
    %cst_29 = arith.constant dense<0.000000e+00> : vector<16x32xf32>
    %85 = tpu.matmul %83, %84, %cst_29 {dimension_numbers = #tpu.dot_dimension_numbers<[1], [0], [0], [1], [0, 0, 1, 1], [], []>} : vector<16x4xf32>, vector<4x32xf32>, vector<16x32xf32> -> vector<16x32xf32>
    %86 = arith.addf %79, %85 : vector<16x32xf32>
    %87 = vector.extract_strided_slice %49 {offsets = [10, 0, 0], sizes = [2, 8, 8], strides = [1, 1, 1]} : vector<16x8x8xf32> to vector<2x8x8xf32>
    %88 = vector.extract_strided_slice %14 {offsets = [0, 0, 20], sizes = [2, 8, 4], strides = [1, 1, 1]} : vector<2x8x32xf32> to vector<2x8x4xf32>
    "tpu.trace_start"() <{level = 10 : i32, message = "bqk,bkd->bqd"}> : () -> ()
    %cst_30 = arith.constant dense<0.000000e+00> : vector<2x8x4xf32>
    %89 = tpu.matmul %87, %88, %cst_30 {dimension_numbers = #tpu.dot_dimension_numbers<[2], [1], [1], [2], [0, 0, 0, 1, 1, 2], [0], [0]>} : vector<2x8x8xf32>, vector<2x8x4xf32>, vector<2x8x4xf32> -> vector<2x8x4xf32>
    "tpu.trace_stop"() : () -> ()
    %90 = vector.shape_cast %89 : vector<2x8x4xf32> to vector<16x4xf32>
    %91 = vector.extract_strided_slice %50 {offsets = [20, 0], sizes = [4, 32], strides = [1, 1]} : vector<32x32xf32> to vector<4x32xf32>
    %cst_31 = arith.constant dense<0.000000e+00> : vector<16x32xf32>
    %92 = tpu.matmul %90, %91, %cst_31 {dimension_numbers = #tpu.dot_dimension_numbers<[1], [0], [0], [1], [0, 0, 1, 1], [], []>} : vector<16x4xf32>, vector<4x32xf32>, vector<16x32xf32> -> vector<16x32xf32>
    %93 = arith.addf %86, %92 : vector<16x32xf32>
    %94 = vector.extract_strided_slice %49 {offsets = [12, 0, 0], sizes = [2, 8, 8], strides = [1, 1, 1]} : vector<16x8x8xf32> to vector<2x8x8xf32>
    %95 = vector.extract_strided_slice %14 {offsets = [0, 0, 24], sizes = [2, 8, 4], strides = [1, 1, 1]} : vector<2x8x32xf32> to vector<2x8x4xf32>
    "tpu.trace_start"() <{level = 10 : i32, message = "bqk,bkd->bqd"}> : () -> ()
    %cst_32 = arith.constant dense<0.000000e+00> : vector<2x8x4xf32>
    %96 = tpu.matmul %94, %95, %cst_32 {dimension_numbers = #tpu.dot_dimension_numbers<[2], [1], [1], [2], [0, 0, 0, 1, 1, 2], [0], [0]>} : vector<2x8x8xf32>, vector<2x8x4xf32>, vector<2x8x4xf32> -> vector<2x8x4xf32>
    "tpu.trace_stop"() : () -> ()
    %97 = vector.shape_cast %96 : vector<2x8x4xf32> to vector<16x4xf32>
    %98 = vector.extract_strided_slice %50 {offsets = [24, 0], sizes = [4, 32], strides = [1, 1]} : vector<32x32xf32> to vector<4x32xf32>
    %cst_33 = arith.constant dense<0.000000e+00> : vector<16x32xf32>
    %99 = tpu.matmul %97, %98, %cst_33 {dimension_numbers = #tpu.dot_dimension_numbers<[1], [0], [0], [1], [0, 0, 1, 1], [], []>} : vector<16x4xf32>, vector<4x32xf32>, vector<16x32xf32> -> vector<16x32xf32>
    %100 = arith.addf %93, %99 : vector<16x32xf32>
    %101 = vector.extract_strided_slice %49 {offsets = [14, 0, 0], sizes = [2, 8, 8], strides = [1, 1, 1]} : vector<16x8x8xf32> to vector<2x8x8xf32>
    %102 = vector.extract_strided_slice %14 {offsets = [0, 0, 28], sizes = [2, 8, 4], strides = [1, 1, 1]} : vector<2x8x32xf32> to vector<2x8x4xf32>
    "tpu.trace_start"() <{level = 10 : i32, message = "bqk,bkd->bqd"}> : () -> ()
    %cst_34 = arith.constant dense<0.000000e+00> : vector<2x8x4xf32>
    %103 = tpu.matmul %101, %102, %cst_34 {dimension_numbers = #tpu.dot_dimension_numbers<[2], [1], [1], [2], [0, 0, 0, 1, 1, 2], [0], [0]>} : vector<2x8x8xf32>, vector<2x8x4xf32>, vector<2x8x4xf32> -> vector<2x8x4xf32>
    "tpu.trace_stop"() : () -> ()
    %104 = vector.shape_cast %103 : vector<2x8x4xf32> to vector<16x4xf32>
    %105 = vector.extract_strided_slice %50 {offsets = [28, 0], sizes = [4, 32], strides = [1, 1]} : vector<32x32xf32> to vector<4x32xf32>
    %cst_35 = arith.constant dense<0.000000e+00> : vector<16x32xf32>
    %106 = tpu.matmul %104, %105, %cst_35 {dimension_numbers = #tpu.dot_dimension_numbers<[1], [0], [0], [1], [0, 0, 1, 1], [], []>} : vector<16x4xf32>, vector<4x32xf32>, vector<16x32xf32> -> vector<16x32xf32>
    %107 = arith.addf %100, %106 : vector<16x32xf32>
    %c0_36 = arith.constant 0 : index
    %c0_37 = arith.constant 0 : index
    %108 = vector.load %arg5[%c0_36, %c0_37] : memref<1x32xf32, #tpu.memory_space<vmem>>, vector<1x32xf32>
    %109 = vector.broadcast %108 : vector<1x32xf32> to vector<16x32xf32>
    %110 = arith.addf %107, %109 : vector<16x32xf32>
    %c0_38 = arith.constant 0 : index
    %c0_39 = arith.constant 0 : index
    %111 = vector.load %arg10[%c0_38, %c0_39] : memref<1x32xf32, #tpu.memory_space<vmem>>, vector<1x32xf32>
    %c0_40 = arith.constant 0 : index
    %c0_41 = arith.constant 0 : index
    %112 = vector.load %arg11[%c0_40, %c0_41] : memref<1x32xf32, #tpu.memory_space<vmem>>, vector<1x32xf32>
    %113 = arith.addf %1, %110 : vector<16x32xf32>
    %cst_42 = arith.constant dense<0.000000e+00> : vector<16xf32>
    %114 = vector.multi_reduction <add>, %113, %cst_42 [1] : vector<16x32xf32> to vector<16xf32>
    %115 = vector.shape_cast %114 : vector<16xf32> to vector<16x1xf32>
    %cst_43 = arith.constant 3.200000e+01 : f32
    %116 = vector.broadcast %cst_43 : f32 to vector<16x1xf32>
    %117 = arith.divf %115, %116 : vector<16x1xf32>
    %118 = vector.broadcast %117 : vector<16x1xf32> to vector<16x32xf32>
    %119 = arith.subf %113, %118 : vector<16x32xf32>
    %120 = arith.mulf %119, %119 : vector<16x32xf32>
    %cst_44 = arith.constant dense<0.000000e+00> : vector<16xf32>
    %121 = vector.multi_reduction <add>, %120, %cst_44 [1] : vector<16x32xf32> to vector<16xf32>
    %122 = vector.shape_cast %121 : vector<16xf32> to vector<16x1xf32>
    %cst_45 = arith.constant 3.200000e+01 : f32
    %123 = vector.broadcast %cst_45 : f32 to vector<16x1xf32>
    %124 = arith.divf %122, %123 : vector<16x1xf32>
    %125 = vector.broadcast %117 : vector<16x1xf32> to vector<16x32xf32>
    %126 = arith.subf %113, %125 : vector<16x32xf32>
    %cst_46 = arith.constant 9.99999974E-6 : f32
    %127 = vector.broadcast %cst_46 : f32 to vector<16x1xf32>
    %128 = arith.addf %124, %127 : vector<16x1xf32>
    %129 = math.rsqrt %128 : vector<16x1xf32>
    %130 = vector.broadcast %129 : vector<16x1xf32> to vector<16x32xf32>
    %131 = arith.mulf %126, %130 : vector<16x32xf32>
    %132 = vector.broadcast %111 : vector<1x32xf32> to vector<16x32xf32>
    %133 = arith.mulf %131, %132 : vector<16x32xf32>
    %134 = vector.broadcast %112 : vector<1x32xf32> to vector<16x32xf32>
    %135 = arith.addf %133, %134 : vector<16x32xf32>
    %c0_47 = arith.constant 0 : index
    %c0_48 = arith.constant 0 : index
    %136 = vector.load %arg6[%c0_47, %c0_48] : memref<32x128xf32, #tpu.memory_space<vmem>>, vector<32x128xf32>
    %cst_49 = arith.constant dense<0.000000e+00> : vector<16x128xf32>
    %137 = tpu.matmul %135, %136, %cst_49 {dimension_numbers = #tpu.dot_dimension_numbers<[1], [0], [0], [1], [0, 0, 1, 1], [], []>} : vector<16x32xf32>, vector<32x128xf32>, vector<16x128xf32> -> vector<16x128xf32>
    %c0_50 = arith.constant 0 : index
    %c0_51 = arith.constant 0 : index
    %138 = vector.load %arg7[%c0_50, %c0_51] : memref<1x128xf32, #tpu.memory_space<vmem>>, vector<1x128xf32>
    %139 = vector.broadcast %138 : vector<1x128xf32> to vector<16x128xf32>
    %140 = arith.addf %137, %139 : vector<16x128xf32>
    %cst_52 = arith.constant 0.000000e+00 : f32
    %141 = vector.broadcast %cst_52 : f32 to vector<16x128xf32>
    %142 = arith.maximumf %140, %141 : vector<16x128xf32>
    %c0_53 = arith.constant 0 : index
    %c0_54 = arith.constant 0 : index
    %143 = vector.load %arg8[%c0_53, %c0_54] : memref<128x32xf32, #tpu.memory_space<vmem>>, vector<128x32xf32>
    %cst_55 = arith.constant dense<0.000000e+00> : vector<16x32xf32>
    %144 = tpu.matmul %142, %143, %cst_55 {dimension_numbers = #tpu.dot_dimension_numbers<[1], [0], [0], [1], [0, 0, 1, 1], [], []>} : vector<16x128xf32>, vector<128x32xf32>, vector<16x32xf32> -> vector<16x32xf32>
    %c0_56 = arith.constant 0 : index
    %c0_57 = arith.constant 0 : index
    %145 = vector.load %arg9[%c0_56, %c0_57] : memref<1x32xf32, #tpu.memory_space<vmem>>, vector<1x32xf32>
    %146 = vector.broadcast %145 : vector<1x32xf32> to vector<16x32xf32>
    %147 = arith.addf %144, %146 : vector<16x32xf32>
    %148 = arith.addf %135, %147 : vector<16x32xf32>
    %cst_58 = arith.constant dense<0.000000e+00> : vector<16xf32>
    %149 = vector.multi_reduction <add>, %148, %cst_58 [1] : vector<16x32xf32> to vector<16xf32>
    %150 = vector.shape_cast %149 : vector<16xf32> to vector<16x1xf32>
    %cst_59 = arith.constant 3.200000e+01 : f32
    %151 = vector.broadcast %cst_59 : f32 to vector<16x1xf32>
    %152 = arith.divf %150, %151 : vector<16x1xf32>
    %153 = vector.broadcast %152 : vector<16x1xf32> to vector<16x32xf32>
    %154 = arith.subf %148, %153 : vector<16x32xf32>
    %155 = arith.mulf %154, %154 : vector<16x32xf32>
    %cst_60 = arith.constant dense<0.000000e+00> : vector<16xf32>
    %156 = vector.multi_reduction <add>, %155, %cst_60 [1] : vector<16x32xf32> to vector<16xf32>
    %157 = vector.shape_cast %156 : vector<16xf32> to vector<16x1xf32>
    %cst_61 = arith.constant 3.200000e+01 : f32
    %158 = vector.broadcast %cst_61 : f32 to vector<16x1xf32>
    %159 = arith.divf %157, %158 : vector<16x1xf32>
    %160 = vector.broadcast %152 : vector<16x1xf32> to vector<16x32xf32>
    %161 = arith.subf %148, %160 : vector<16x32xf32>
    %cst_62 = arith.constant 9.99999974E-6 : f32
    %162 = vector.broadcast %cst_62 : f32 to vector<16x1xf32>
    %163 = arith.addf %159, %162 : vector<16x1xf32>
    %164 = math.rsqrt %163 : vector<16x1xf32>
    %165 = vector.broadcast %164 : vector<16x1xf32> to vector<16x32xf32>
    %166 = arith.mulf %161, %165 : vector<16x32xf32>
    %167 = vector.broadcast %111 : vector<1x32xf32> to vector<16x32xf32>
    %168 = arith.mulf %166, %167 : vector<16x32xf32>
    %169 = vector.broadcast %112 : vector<1x32xf32> to vector<16x32xf32>
    %170 = arith.addf %168, %169 : vector<16x32xf32>
    %171 = vector.shape_cast %170 : vector<16x32xf32> to vector<2x8x32xf32>
    %c0_63 = arith.constant 0 : index
    %c0_64 = arith.constant 0 : index
    %c0_65 = arith.constant 0 : index
    %172 = vector.load %arg12[%c0_63, %c0_64, %c0_65] : memref<2x8x32xf32, #tpu.memory_space<vmem>>, vector<2x8x32xf32>
    tpu.vector_store %arg12[%c0_63, %c0_64, %c0_65], %171 {strides = array<i32>} : memref<2x8x32xf32, #tpu.memory_space<vmem>>, vector<2x8x32xf32>,
    return
  }
  func.func @transform_0(%arg0: i32) -> (i32, i32, i32) {
    %c0_i32 = arith.constant 0 : i32
    %c0_i32_0 = arith.constant 0 : i32
    %c0_i32_1 = arith.constant 0 : i32
    return %arg0, %c0_i32, %c0_i32_0 : i32, i32, i32
  }
  func.func @transform_1(%arg0: i32) -> (i32, i32) {
    %c0_i32 = arith.constant 0 : i32
    %c0_i32_0 = arith.constant 0 : i32
    %c0_i32_1 = arith.constant 0 : i32
    return %c0_i32, %c0_i32_0 : i32, i32
  }
  func.func @transform_2(%arg0: i32) -> (i32, i32) {
    %c0_i32 = arith.constant 0 : i32
    %c0_i32_0 = arith.constant 0 : i32
    %c0_i32_1 = arith.constant 0 : i32
    return %c0_i32, %c0_i32_0 : i32, i32
  }
  func.func @transform_3(%arg0: i32) -> (i32, i32) {
    %c0_i32 = arith.constant 0 : i32
    %c0_i32_0 = arith.constant 0 : i32
    %c0_i32_1 = arith.constant 0 : i32
    return %c0_i32, %c0_i32_0 : i32, i32
  }
  func.func @transform_4(%arg0: i32) -> (i32, i32) {
    %c0_i32 = arith.constant 0 : i32
    %c0_i32_0 = arith.constant 0 : i32
    %c0_i32_1 = arith.constant 0 : i32
    return %c0_i32, %c0_i32_0 : i32, i32
  }
  func.func @transform_5(%arg0: i32) -> (i32, i32) {
    %c0_i32 = arith.constant 0 : i32
    %c0_i32_0 = arith.constant 0 : i32
    %c0_i32_1 = arith.constant 0 : i32
    return %c0_i32, %c0_i32_0 : i32, i32
  }
  func.func @transform_6(%arg0: i32) -> (i32, i32) {
    %c0_i32 = arith.constant 0 : i32
    %c0_i32_0 = arith.constant 0 : i32
    %c0_i32_1 = arith.constant 0 : i32
    return %c0_i32, %c0_i32_0 : i32, i32
  }
  func.func @transform_7(%arg0: i32) -> (i32, i32) {
    %c0_i32 = arith.constant 0 : i32
    %c0_i32_0 = arith.constant 0 : i32
    %c0_i32_1 = arith.constant 0 : i32
    return %c0_i32, %c0_i32_0 : i32, i32
  }
  func.func @transform_8(%arg0: i32) -> (i32, i32) {
    %c0_i32 = arith.constant 0 : i32
    %c0_i32_0 = arith.constant 0 : i32
    %c0_i32_1 = arith.constant 0 : i32
    return %c0_i32, %c0_i32_0 : i32, i32
  }
  func.func @transform_9(%arg0: i32) -> (i32, i32) {
    %c0_i32 = arith.constant 0 : i32
    %c0_i32_0 = arith.constant 0 : i32
    %c0_i32_1 = arith.constant 0 : i32
    return %c0_i32, %c0_i32_0 : i32, i32
  }
  func.func @transform_10(%arg0: i32) -> (i32, i32) {
    %c0_i32 = arith.constant 0 : i32
    %c0_i32_0 = arith.constant 0 : i32
    %c0_i32_1 = arith.constant 0 : i32
    return %c0_i32, %c0_i32_0 : i32, i32
  }
  func.func @transform_11(%arg0: i32) -> (i32, i32, i32) {
    %c0_i32 = arith.constant 0 : i32
    %c0_i32_0 = arith.constant 0 : i32
    %c0_i32_1 = arith.constant 0 : i32
    return %arg0, %c0_i32, %c0_i32_0 : i32, i32, i32
  }
}

</mosaic_0001>

<bundles_post_ra>
// kernel: tpu_custom_call.1
= control target key start
LH: loop header
LB: loop body
LE: loop exit
PB: predicated region body
PF: predicated region fallthrough
CT: control target
= control target key end

     0   :  { %vm52_vm0 = vcmask 261120   ;;  %s4998_s0 = inlined_call_operand.vmem [shape: f32[2,8,32], index: 0, kind: input, shape index: {}]   ;;  %s4999_s1 = inlined_call_operand.vmem [shape: f32[32,96], index: 1, kind: input, shape index: {}]   ;;  %s5000_s2 = inlined_call_operand.vmem [shape: f32[1,96], index: 2, kind: input, shape index: {}]   ;;  %s5001_s3 = inlined_call_operand.vmem [shape: f32[32,32], index: 3, kind: input, shape index: {}]   ;;  %s5002_s4 = inlined_call_operand.vmem [shape: f32[1,32], index: 4, kind: input, shape index: {}]   ;;  %s5003_s5 = inlined_call_operand.vmem [shape: f32[32,128], index: 5, kind: input, shape index: {}]   ;;  %s5004_s6 = inlined_call_operand.vmem [shape: f32[1,128], index: 6, kind: input, shape index: {}]   ;;  %s5005_s7 = inlined_call_operand.vmem [shape: f32[128,32], index: 7, kind: input, shape index: {}]   ;;  %s5006_s8 = inlined_call_operand.vmem [shape: f32[1,32], index: 8, kind: input, shape index: {}]   ;;  %s5007_s9 = inlined_call_operand.vmem [shape: f32[1,32], index: 9, kind: input, shape index: {}]   ;;  %s5008_s10 = inlined_call_operand.vmem [shape: f32[1,32], index: 10, kind: input, shape index: {}]   ;;  %s5009_s11 = inlined_call_operand.hbm [shape: f32[2,8,32], index: 11, kind: output, shape index: {}]  }
   0x1   :  { %v41_v0 = vld [vmem:[%s4999_s1] sm:$0xff]  ;;  %v42_v1 = vld [vmem:[%s4999_s1 + $0x8] sm:$0xff]  ;;  %v43_v2 = vld [vmem:[%s4999_s1 + $0x10] sm:$0xff] }
   0x2   :  { %v4222_v3 = vpack.c.bf16 %v42_v1, %v41_v0  ;;  %v44_v4 = vld [vmem:[%s4999_s1 + $0x18] sm:$0xff]  ;;  %v39_v5 = vld [vmem:[%s4998_s0] sm:$0xff] }
   0x3   :  { %v4226_v6 = vpack.c.bf16 %v44_v4, %v43_v2  ;;  %3973 = vmatprep.mubr.msk.f32.mxu1 %vm52_vm0, %v39_v5 }
   0x4   :  { %16 = vsyncpa [#allocation3], 0  ;;  %4223 = vmatprep.subr.bf16.mxu1 %v4222_v3  ;;  %v40_v7 = vld [vmem:[%s4998_s0 + $0x8] sm:$0xff]  ;;  %v4410_v8 = vmov 0.0   ;;  %vm4411_vm1 = vmmov 0   ;;  %s4412_s30 = smov 92  }
   0x5   :  { %4225 = vmatpush3.bf16.msra.mxu1 %v4222_v3  ;;  %4006 = vmatprep.subr.mxu0 %v4410_v8  ;;  %v3765_v9 = vld [vmem:[%s5000_s2] ss:$0 sm:$0xff]  ;;  %s4413_s12 = smov 96   ;;  %s4414_s13 = smov 124   ;;  %vm139_vm2 = vcmask 31744   ;;  %vm1385_vm3 = vcmask 64512  }
   0x6   :  { %4227 = vmatprep.subr.bf16.mxu1 %v4226_v6  ;;  %4008 = vmatprep.mubr.msk.f32.mxu0 %vm4411_vm1, %v4410_v8  ;;  %s4415_s2 = smov 88   ;;  %s4416_s14 = smov 120   ;;  %vm1878_vm4 = vcmask 1043456  }
   0x7   :  { %s4417_s15 = smov 84   ;;  %s4418_s16 = smov 80  }
   0x8   :  { %s4419_s17 = smov 116   ;;  %s4420_s18 = smov 112  }
   0x9   :  { %4229 = vmatpush3.bf16.msra.mxu1 %v4226_v6  ;;  %s4421_s19 = smov 76   ;;  %s4422_s20 = smov 72  }
   0xa   :  { %3976 = vmatprep.subr.mxu1 %v4410_v8  ;;  %s4423_s21 = smov 108   ;;  %s4424_s22 = smov 104  }
   0xb   :  { %s4425_s23 = smov 68   ;;  %s4426_s24 = smov 100  }
   0xc   :  { %3974 = vmatmul.mubr.msk.f32.vlgmr.msra.gmra.mrb[0].mxu1 %vm52_vm0, %v40_v7  ;;  %s4427_s25 = smov 64   ;;  %s4428_s26 = smov 60  }
   0xd   :  { %3978 = vmatprep.mubr.msk.f32.mxu1 %vm4411_vm1, %v4410_v8  ;;  %s4429_s27 = smov 56   ;;  %s4430_s29 = smov 52  }
  0xdf   :  { %v3975_v10 = vpop.f32.mrb[0].mxu1 }
  0xe0   :  { %v125_v11 = vpop.f32.mrb[1].mxu1  ;;  %v4531_v13 = vadd.f32 %v3975_v10, %v3765_v9 }
  0xe1   :  { %v4527_v12 = vadd.f32 %v3765_v9, %v125_v11 }
  0xe2   :  { %v4539_v15 = vmul.f32 0.5, %v4531_v13 }
  0xe3   :  { %295 = vrot.lane.b32.xlu1 %v4527_v12, %s4412_s30  ;;  %137 = vrot.lane.b32.xlu0 %v4527_v12, %s4413_s12  ;;  %v4534_v14 = vmul.f32 0.5, %v4527_v12 }
  0xe7   :  { %216 = vrot.lane.b32.xlu0 %v4531_v13, %s4413_s12  ;;  %293 = vrot.lane.b32.xlu1 %v4534_v14, %s4414_s13 }
  0xeb   :  { %373 = vrot.lane.b32.xlu0 %v4531_v13, %s4412_s30  ;;  %371 = vrot.lane.b32.xlu1 %v4539_v15, %s4414_s13  ;;  %s4431_s30 = smov 48  }
  0xef   :  { %451 = vrot.lane.b32.xlu0 %v4527_v12, %s4415_s2  ;;  %449 = vrot.lane.b32.xlu1 %v4534_v14, %s4416_s14 }
  0xf3   :  { %529 = vrot.lane.b32.xlu0 %v4531_v13, %s4415_s2  ;;  %527 = vrot.lane.b32.xlu1 %v4539_v15, %s4416_s14  ;;  %s4432_s2 = smov 44   ;;  %s4433_s14 = smov 40  }
  0xf7   :  { %607 = vrot.lane.b32.xlu0 %v4527_v12, %s4417_s15  ;;  %685 = vrot.lane.b32.xlu1 %v4531_v13, %s4417_s15 }
  0xfb   :  { %763 = vrot.lane.b32.xlu0 %v4527_v12, %s4418_s16  ;;  %683 = vrot.lane.b32.xlu1 %v4539_v15, %s4419_s17 }
  0xff   :  { %841 = vrot.lane.b32.xlu0 %v4531_v13, %s4418_s16  ;;  %839 = vrot.lane.b32.xlu1 %v4539_v15, %s4420_s18 }
 0x103   :  { %997 = vrot.lane.b32.xlu0 %v4531_v13, %s4421_s19  ;;  %919 = vrot.lane.b32.xlu1 %v4527_v12, %s4421_s19 }
 0x107   :  { %1075 = vrot.lane.b32.xlu0 %v4527_v12, %s4422_s20  ;;  %995 = vrot.lane.b32.xlu1 %v4539_v15, %s4423_s21 }
 0x10b   :  { %605 = vrot.lane.b32.xlu0 %v4534_v14, %s4419_s17  ;;  %1153 = vrot.lane.b32.xlu1 %v4531_v13, %s4422_s20  ;;  %s4434_s17 = smov 36  }
 0x10f   :  { %1151 = vrot.lane.b32.xlu1 %v4539_v15, %s4424_s22 }
 0x113   :  { %1231 = vrot.lane.b32.xlu1 %v4527_v12, %s4425_s23 }
 0x117   :  { %761 = vrot.lane.b32.xlu1 %v4534_v14, %s4420_s18 }
 0x11b   :  { %917 = vrot.lane.b32.xlu1 %v4534_v14, %s4423_s21 }
 0x11f   :  { %1073 = vrot.lane.b32.xlu1 %v4534_v14, %s4424_s22 }
 0x155   :  { %v296_v16 = vpop.permute.xlu1 %295  ;;  %v138_v17 = vpop.permute.xlu0 %137 }
 0x156   :  { %3977 = vmatpush3.xpose.msk.msra.mxu1 %vm139_vm2, %v138_v17 }
 0x157   :  { %3981 = vmatprep.subr.mxu1 %v4410_v8 }
 0x159   :  { %v217_v18 = vpop.permute.xlu0 %216  ;;  %v294_v19 = vpop.permute.xlu1 %293  ;;  %3979 = vmatmul.mubr.msk.f32.vlgmr.msra.gmra.mrb[2].mxu1 %vm139_vm2, %v4534_v14 }
 0x15a   :  { %3982 = vmatpush3.xpose.msk.msra.mxu1 %vm139_vm2, %v217_v18  ;;  %3983 = vmatprep.mubr.msk.f32.mxu1 %vm4411_vm1, %v4410_v8 }
 0x15b   :  { %3986 = vmatprep.subr.mxu1 %v4410_v8 }
 0x15d   :  { %v374_v20 = vpop.permute.xlu0 %373  ;;  %v372_v21 = vpop.permute.xlu1 %371  ;;  %3984 = vmatmul.mubr.msk.f32.vlgmr.msra.gmra.mrb[4].mxu1 %vm139_vm2, %v4539_v15 }
 0x15e   :  { %3987 = vmatpush3.xpose.msk.msra.mxu1 %vm139_vm2, %v296_v16  ;;  %3988 = vmatprep.mubr.msk.f32.mxu1 %vm4411_vm1, %v4410_v8 }
 0x15f   :  { %3991 = vmatprep.subr.mxu1 %v4410_v8 }
 0x161   :  { %v452_v22 = vpop.permute.xlu0 %451  ;;  %v450_v23 = vpop.permute.xlu1 %449  ;;  %3989 = vmatmul.mubr.msk.f32.vlgmr.msra.gmra.mrb[6].mxu1 %vm139_vm2, %v294_v19 }
 0x162   :  { %3992 = vmatpush3.xpose.msk.msra.mxu1 %vm139_vm2, %v374_v20  ;;  %3993 = vmatprep.mubr.msk.f32.mxu1 %vm4411_vm1, %v4410_v8 }
 0x163   :  { %3996 = vmatprep.subr.mxu1 %v4410_v8 }
 0x165   :  { %v530_v24 = vpop.permute.xlu0 %529  ;;  %v528_v25 = vpop.permute.xlu1 %527  ;;  %3994 = vmatmul.mubr.msk.f32.vlgmr.msra.gmra.mrb[8].mxu1 %vm139_vm2, %v372_v21 }
 0x166   :  { %3997 = vmatpush3.xpose.msk.msra.mxu1 %vm139_vm2, %v452_v22  ;;  %3998 = vmatprep.mubr.msk.f32.mxu1 %vm4411_vm1, %v4410_v8 }
 0x167   :  { %4001 = vmatprep.subr.mxu1 %v4410_v8 }
 0x169   :  { %v608_v26 = vpop.permute.xlu0 %607  ;;  %v686_v27 = vpop.permute.xlu1 %685  ;;  %3999 = vmatmul.mubr.msk.f32.vlgmr.msra.gmra.mrb[10].mxu1 %vm139_vm2, %v450_v23 }
 0x16a   :  { %4002 = vmatpush3.xpose.msk.msra.mxu1 %vm139_vm2, %v530_v24  ;;  %4007 = vmatpush3.xpose.msk.msra.mxu0 %vm139_vm2, %v608_v26 }
 0x16b   :  { %4003 = vmatprep.mubr.msk.f32.mxu1 %vm4411_vm1, %v4410_v8  ;;  %4011 = vmatprep.subr.mxu1 %v4410_v8 }
 0x16c   :  { %4016 = vmatprep.subr.mxu0 %v4410_v8 }
 0x16d   :  { %v764_v28 = vpop.permute.xlu0 %763  ;;  %v684_v29 = vpop.permute.xlu1 %683  ;;  %4004 = vmatmul.mubr.msk.f32.vlgmr.msra.gmra.mrb[12].mxu1 %vm139_vm2, %v528_v25 }
 0x16e   :  { %4012 = vmatpush3.xpose.msk.msra.mxu1 %vm139_vm2, %v686_v27  ;;  %4013 = vmatprep.mubr.msk.f32.mxu1 %vm4411_vm1, %v4410_v8 }
 0x16f   :  { %4021 = vmatprep.subr.mxu1 %v4410_v8 }
 0x171   :  { %v842_v30 = vpop.permute.xlu0 %841  ;;  %v840_v31 = vpop.permute.xlu1 %839  ;;  %4014 = vmatmul.mubr.msk.f32.vlgmr.msra.gmra.mrb[14].mxu1 %vm139_vm2, %v684_v29 }
 0x172   :  { %4022 = vmatpush3.xpose.msk.msra.mxu1 %vm139_vm2, %v842_v30  ;;  %4023 = vmatprep.mubr.msk.f32.mxu1 %vm4411_vm1, %v4410_v8 }
 0x173   :  { %4031 = vmatprep.subr.mxu1 %v4410_v8 }
 0x175   :  { %v998_v32 = vpop.permute.xlu0 %997  ;;  %v920_v33 = vpop.permute.xlu1 %919  ;;  %4024 = vmatmul.mubr.msk.f32.vlgmr.msra.gmra.mrb[16].mxu1 %vm139_vm2, %v840_v31 }
 0x176   :  { %4032 = vmatpush3.xpose.msk.msra.mxu1 %vm139_vm2, %v998_v32  ;;  %4033 = vmatprep.mubr.msk.f32.mxu1 %vm4411_vm1, %v4410_v8 }
 0x177   :  { %4041 = vmatprep.subr.mxu1 %v4410_v8 }
 0x179   :  { %v1076_v34 = vpop.permute.xlu0 %1075  ;;  %v996_v35 = vpop.permute.xlu1 %995 }
 0x17a   :  { %4034 = vmatmul.mubr.msk.f32.vlgmr.msra.gmra.mrb[18].mxu1 %vm139_vm2, %v996_v35 }
 0x17b   :  { %4043 = vmatprep.mubr.msk.f32.mxu1 %vm4411_vm1, %v4410_v8 }
 0x17d   :  { %v606_v36 = vpop.permute.xlu0 %605  ;;  %v1154_v37 = vpop.permute.xlu1 %1153 }
 0x17e   :  { %4009 = vmatmul.mubr.msk.f32.vlgmr.msra.gmra.mrb[0].mxu0 %vm139_vm2, %v606_v36  ;;  %4042 = vmatpush3.xpose.msk.msra.mxu1 %vm139_vm2, %v1154_v37 }
 0x17f   :  { %4017 = vmatpush3.xpose.msk.msra.mxu0 %vm139_vm2, %v764_v28  ;;  %4018 = vmatprep.mubr.msk.f32.mxu0 %vm4411_vm1, %v4410_v8 }
 0x180   :  { %4026 = vmatprep.subr.mxu0 %v4410_v8  ;;  %4051 = vmatprep.subr.mxu1 %v4410_v8 }
 0x181   :  { %v1152_v38 = vpop.permute.xlu1 %1151 }
 0x182   :  { %4044 = vmatmul.mubr.msk.f32.vlgmr.msra.gmra.mrb[20].mxu1 %vm139_vm2, %v1152_v38 }
 0x183   :  { %4053 = vmatprep.mubr.msk.f32.mxu1 %vm4411_vm1, %v4410_v8 }
 0x185   :  { %v1232_v39 = vpop.permute.xlu1 %1231 }
 0x189   :  { %v762_v40 = vpop.permute.xlu1 %761 }
 0x18a   :  { %4019 = vmatmul.mubr.msk.f32.vlgmr.msra.gmra.mrb[2].mxu0 %vm139_vm2, %v762_v40 }
 0x18b   :  { %4027 = vmatpush3.xpose.msk.msra.mxu0 %vm139_vm2, %v920_v33  ;;  %4028 = vmatprep.mubr.msk.f32.mxu0 %vm4411_vm1, %v4410_v8 }
 0x18c   :  { %4036 = vmatprep.subr.mxu0 %v4410_v8 }
 0x18d   :  { %v918_v41 = vpop.permute.xlu1 %917 }
 0x18e   :  { %4029 = vmatmul.mubr.msk.f32.vlgmr.msra.gmra.mrb[4].mxu0 %vm139_vm2, %v918_v41 }
 0x18f   :  { %4037 = vmatpush3.xpose.msk.msra.mxu0 %vm139_vm2, %v1076_v34  ;;  %4038 = vmatprep.mubr.msk.f32.mxu0 %vm4411_vm1, %v4410_v8 }
 0x190   :  { %4046 = vmatprep.subr.mxu0 %v4410_v8 }
 0x191   :  { %v1074_v42 = vpop.permute.xlu1 %1073 }
 0x192   :  { %4039 = vmatmul.mubr.msk.f32.vlgmr.msra.gmra.mrb[6].mxu0 %vm139_vm2, %v1074_v42 }
 0x193   :  { %4047 = vmatpush3.xpose.msk.msra.mxu0 %vm139_vm2, %v1232_v39  ;;  %4048 = vmatprep.mubr.msk.f32.mxu0 %vm4411_vm1, %v4410_v8 }
 0x194   :  { %4056 = vmatprep.subr.mxu0 %v4410_v8 }
 0x22c   :  { %v211_v43 = vpop.f32.mrb[2].mxu1 }
 0x22d   :  { %v3980_v44 = vpop.f32.mrb[3].mxu1  ;;  %v1386_v45 = vsel %vm1385_vm3, %v211_v43, -inf }
 0x22e   :  { %1387 = vmax.xlane.f32.xlu0 %v1386_v45 }
 0x230   :  { %v289_v46 = vpop.f32.mrb[4].mxu1 }
 0x231   :  { %v3985_v47 = vpop.f32.mrb[5].mxu1  ;;  %v1389_v48 = vsel %vm1385_vm3, %v289_v46, -inf }
 0x232   :  { %1390 = vmax.xlane.f32.xlu1 %v1389_v48 }
 0x234   :  { %v367_v49 = vpop.f32.mrb[6].mxu1 }
 0x235   :  { %v3990_v50 = vpop.f32.mrb[7].mxu1  ;;  %v1392_v51 = vsel %vm1385_vm3, %v367_v49, -inf }
 0x236   :  { %1393 = vmax.xlane.f32.xlu0 %v1392_v51 }
 0x238   :  { %v4642_v52 = vpop.f32.mrb[8].mxu1 }
 0x239   :  { %v3995_v53 = vpop.f32.mrb[9].mxu1  ;;  %v1395_v54 = vsel %vm1385_vm3, %v4642_v52, -inf }
 0x23a   :  { %1396 = vmax.xlane.f32.xlu0 %v1395_v54 }
 0x23c   :  { %v4646_v55 = vpop.f32.mrb[10].mxu1 }
 0x23d   :  { %v4000_v56 = vpop.f32.mrb[11].mxu1  ;;  %v1398_v57 = vsel %vm1385_vm3, %v4646_v55, -inf }
 0x23e   :  { %1399 = vmax.xlane.f32.xlu1 %v1398_v57 }
 0x240   :  { %v4650_v58 = vpop.f32.mrb[12].mxu1 }
 0x241   :  { %v4005_v59 = vpop.f32.mrb[13].mxu1  ;;  %v1401_v17 = vsel %vm1385_vm3, %v4650_v58, -inf }
 0x244   :  { %v4652_v60 = vpop.f32.mrb[14].mxu1 }
 0x245   :  { %v4015_v61 = vpop.f32.mrb[15].mxu1  ;;  %v1407_v48 = vsel %vm1385_vm3, %v4652_v60, -inf }
 0x248   :  { %v4654_v62 = vpop.f32.mrb[16].mxu1 }
 0x249   :  { %v4025_v63 = vpop.f32.mrb[17].mxu1 }
 0x24d   :  { %v4656_v0 = vpop.f32.mrb[18].mxu1 }
 0x24e   :  { %v4035_v1 = vpop.f32.mrb[19].mxu1 }
 0x24f   :  { %1309 = vrot.lane.b32.xlu1 %v4531_v13, %s4425_s23 }
 0x250   :  { %1229 = vrot.lane.b32.xlu0 %v4534_v14, %s4426_s24 }
 0x251   :  { %v4662_v2 = vpop.f32.mrb[0].mxu0 }
 0x252   :  { %v4010_v3 = vpop.f32.mrb[1].mxu0  ;;  %v1404_v1 = vsel %vm1385_vm3, %v4662_v2, -inf }
 0x255   :  { %v4664_v4 = vpop.f32.mrb[20].mxu1 }
 0x256   :  { %v4045_v5 = vpop.f32.mrb[21].mxu1 }
 0x257   :  { %v1413_v5 = vsel %vm1385_vm3, %v4654_v62, -inf }
 0x25d   :  { %v4666_v6 = vpop.f32.mrb[2].mxu0 }
 0x25e   :  { %v4020_v7 = vpop.f32.mrb[3].mxu0  ;;  %v1410_v3 = vsel %vm1385_vm3, %v4666_v6, -inf }
 0x261   :  { %v4668_v9 = vpop.f32.mrb[4].mxu0 }
 0x262   :  { %v4030_v10 = vpop.f32.mrb[5].mxu0 }
 0x265   :  { %v4670_v11 = vpop.f32.mrb[6].mxu0 }
 0x266   :  { %v4040_v16 = vpop.f32.mrb[7].mxu0 }
 0x26f   :  { %1402 = vmax.xlane.f32.xlu0 %v1401_v17 }
 0x2bb   :  { %v1388_v14 = vpop.xlane.xlu0 %1387 }
 0x2bc   :  { %v1434_v18 = vsub.f32 %v211_v43, %v1388_v14 }
 0x2be   :  { %v1450_v19 = vmul.f32 1.442695, %v1434_v18 }
 0x2bf   :  { %v1391_v20 = vpop.xlane.xlu1 %1390 }
 0x2c0   :  { %4312 = vpow2.f32 %v1450_v19  ;;  %v1435_v21 = vsub.f32 %v289_v46, %v1391_v20 }
 0x2c2   :  { %v1452_v22 = vmul.f32 1.442695, %v1435_v21 }
 0x2c3   :  { %v1394_v23 = vpop.xlane.xlu0 %1393 }
 0x2c4   :  { %4314 = vpow2.f32 %v1452_v22  ;;  %v1436_v24 = vsub.f32 %v367_v49, %v1394_v23 }
 0x2c6   :  { %v1454_v25 = vmul.f32 1.442695, %v1436_v24 }
 0x2c7   :  { %v1397_v26 = vpop.xlane.xlu0 %1396 }
 0x2c8   :  { %4316 = vpow2.f32 %v1454_v25  ;;  %v1437_v37 = vsub.f32 %v4642_v52, %v1397_v26 }
 0x2ca   :  { %v4313_v27 = vpop.eup %4312  ;;  %v1456_v38 = vmul.f32 1.442695, %v1437_v37 }
 0x2cb   :  { %v1230_v28 = vpop.permute.xlu0 %1229  ;;  %v1400_v29 = vpop.xlane.xlu1 %1399  ;;  %v1482_v30 = vsel %vm1385_vm3, %v4313_v27, 0.0 }
 0x2cc   :  { %v1438_v31 = vsub.f32 %v4646_v55, %v1400_v29  ;;  %4049 = vmatmul.mubr.msk.f32.vlgmr.msra.gmra.mrb[8].mxu0 %vm139_vm2, %v1230_v28  ;;  %1483 = vadd.xlane.f32.xlu1 %v1482_v30  ;;  %4318 = vpow2.f32 %v1456_v38 }
 0x2cd   :  { %4058 = vmatprep.mubr.msk.f32.mxu0 %vm4411_vm1, %v4410_v8 }
 0x2ce   :  { %v4315_v32 = vpop.eup %4314  ;;  %v1458_v45 = vmul.f32 1.442695, %v1438_v31  ;;  %v1562_v31 = vld [vmem:[%s5001_s3] sm:$0xff] }
 0x2cf   :  { %v1310_v33 = vpop.permute.xlu1 %1309  ;;  %v1485_v34 = vsel %vm1385_vm3, %v4315_v32, 0.0 }
 0x2d0   :  { %4052 = vmatpush3.xpose.msk.msra.mxu1 %vm139_vm2, %v1310_v33  ;;  %1486 = vadd.xlane.f32.xlu0 %v1485_v34 }
 0x2d1   :  { %4061 = vmatprep.subr.mxu1 %v4410_v8 }
 0x2d2   :  { %v4317_v35 = vpop.eup %4316 }
 0x2d3   :  { %v1488_v36 = vsel %vm1385_vm3, %v4317_v35, 0.0 }
 0x2d4   :  { %1489 = vadd.xlane.f32.xlu1 %v1488_v36 }
 0x2d6   :  { %v4319_v42 = vpop.eup %4318 }
 0x2e5   :  { %1307 = vrot.lane.b32.xlu1 %v4539_v15, %s4426_s24  ;;  %v1491_v15 = vsel %vm1385_vm3, %v4319_v42, 0.0 }
 0x2e6   :  { %1566 = vrot.lane.b32.xlu0 %v4527_v12, %s4427_s25 }
 0x2ea   :  { %1642 = vrot.lane.b32.xlu0 %v4531_v13, %s4427_s25 }
 0x2ee   :  { %1718 = vrot.lane.b32.xlu0 %v4527_v12, %s4428_s26 }
 0x2fc   :  { %v1403_v39 = vpop.xlane.xlu0 %1402 }
 0x2fd   :  { %v1439_v40 = vsub.f32 %v4650_v58, %v1403_v39 }
 0x2ff   :  { %v1460_v41 = vmul.f32 1.442695, %v1439_v40 }
 0x301   :  { %4320 = vpow2.f32 %v1460_v41 }
 0x302   :  { %4322 = vpow2.f32 %v1458_v45 }
 0x30b   :  { %v4690_v43 = vpop.eup %4320 }
 0x30c   :  { %v1497_v44 = vsel %vm1385_vm3, %v4690_v43, 0.0  ;;  %v4697_v46 = vpop.eup %4322 }
 0x30d   :  { %1492 = vadd.xlane.f32.xlu0 %v1491_v15  ;;  %1498 = vadd.xlane.f32.xlu1 %v1497_v44  ;;  %v1494_v47 = vsel %vm1385_vm3, %v4697_v46, 0.0 }
 0x31e   :  { %2115 = vrot.lane.b32.xlu1 %v4531_v13, %s4429_s27 }
 0x323   :  { %1794 = vrot.lane.b32.xlu0 %v4531_v13, %s4428_s26 }
 0x342   :  { %1495 = vadd.xlane.f32.xlu0 %v1494_v47  ;;  %1408 = vmax.xlane.f32.xlu1 %v1407_v48 }
 0x358   :  { %2039 = vrot.lane.b32.xlu0 %v4527_v12, %s4429_s27 }
 0x359   :  { %v1484_v49 = vpop.xlane.xlu1 %1483 }
 0x35a   :  { %4324 = vrcp.f32 %v1484_v49 }
 0x35d   :  { %v1487_v50 = vpop.xlane.xlu0 %1486 }
 0x35e   :  { %4326 = vrcp.f32 %v1487_v50 }
 0x361   :  { %v1490_v51 = vpop.xlane.xlu1 %1489  ;;  %v1567_v52 = vpop.permute.xlu0 %1566 }
 0x362   :  { %4328 = vrcp.f32 %v1490_v51  ;;  %4057 = vmatpush3.msra.mxu0 %v1567_v52  ;;  %v1416_v52 = vsel %vm1385_vm3, %v4668_v9, -inf }
 0x363   :  { %4066 = vmatprep.subr.mxu0 %v4410_v8 }
 0x364   :  { %v4325_v53 = vpop.eup %4324 }
 0x365   :  { %v1546_v54 = vmul.f32 %v4325_v53, %v4313_v27  ;;  %v1308_v55 = vpop.permute.xlu1 %1307  ;;  %v1643_v56 = vpop.permute.xlu0 %1642  ;;  %v1422_v53 = vsel %vm1385_vm3, %v4670_v11, -inf }
 0x366   :  { %4054 = vmatmul.mubr.msk.f32.vlgmr.msra.gmra.mrb[22].mxu1 %vm139_vm2, %v1308_v55  ;;  %v1425_v55 = vsel %vm1385_vm3, %v4664_v4, -inf }
 0x367   :  { %4062 = vmatpush3.msra.mxu1 %v1643_v56  ;;  %4059 = vmatmul.mubr.msk.f32.vlgmr.msra.gmra.mrb[10].mxu0 %vm1385_vm3, %v1546_v54  ;;  %v1419_v54 = vsel %vm1385_vm3, %v4656_v0, -inf }
 0x368   :  { %v4327_v57 = vpop.eup %4326  ;;  %4063 = vmatprep.mubr.msk.f32.mxu1 %vm4411_vm1, %v4410_v8  ;;  %4068 = vmatprep.mubr.msk.f32.mxu0 %vm4411_vm1, %v4410_v8 }
 0x369   :  { %v1547_v58 = vmul.f32 %v4327_v57, %v4315_v32  ;;  %v1719_v59 = vpop.permute.xlu0 %1718  ;;  %4071 = vmatprep.subr.mxu1 %v4410_v8  ;;  %v1871_v32 = vrot.slane %v1562_v31, 4  ;;  %v1563_v57 = vld [vmem:[%s5001_s3 + $0x8] sm:$0xff] }
 0x36a   :  { %4067 = vmatpush3.msra.mxu0 %v1719_v59 }
 0x36b   :  { %4064 = vmatmul.mubr.msk.f32.vlgmr.msra.gmra.mrb[24].mxu1 %vm1385_vm3, %v1547_v58  ;;  %4076 = vmatprep.subr.msk.mxu0 %vm1878_vm4, %v1871_v32 }
 0x36c   :  { %v4329_v61 = vpop.eup %4328  ;;  %4073 = vmatprep.mubr.msk.f32.mxu1 %vm4411_vm1, %v4410_v8 }
 0x36d   :  { %v1548_v63 = vmul.f32 %v4329_v61, %v4317_v35 }
 0x36f   :  { %4069 = vmatmul.mubr.msk.f32.vlgmr.msra.gmra.mrb[12].mxu0 %vm1385_vm3, %v1548_v63 }
 0x370   :  { %4077 = vmatpush3.msk.msra.mxu0 %vm1878_vm4, %v1871_v32 }
 0x371   :  { %4081 = vmatprep.subr.msk.mxu0 %vm1878_vm4, %v1562_v31 }
 0x377   :  { %1405 = vmax.xlane.f32.xlu0 %v1404_v1 }
 0x37b   :  { %1411 = vmax.xlane.f32.xlu0 %v1410_v3 }
 0x37f   :  { %1414 = vmax.xlane.f32.xlu0 %v1413_v5 }
 0x39a   :  { %v1493_v7 = vpop.xlane.xlu0 %1492  ;;  %v1499_v19 = vpop.xlane.xlu1 %1498 }
 0x39b   :  { %4330 = vrcp.f32 %v1493_v7 }
 0x39e   :  { %v1795_v10 = vpop.permute.xlu0 %1794  ;;  %v2116_v20 = vpop.permute.xlu1 %2115 }
 0x39f   :  { %v4722_v16 = vpop.f32.mrb[8].mxu0  ;;  %4072 = vmatpush3.msra.mxu1 %v1795_v10 }
 0x3a0   :  { %v4050_v17 = vpop.f32.mrb[9].mxu0  ;;  %4086 = vmatprep.subr.mxu1 %v4410_v8 }
 0x3a5   :  { %v4331_v14 = vpop.eup %4330 }
 0x3a6   :  { %v1549_v18 = vmul.f32 %v4331_v14, %v4319_v42 }
 0x3a8   :  { %4074 = vmatmul.mubr.msk.f32.vlgmr.msra.gmra.mrb[26].mxu1 %vm1385_vm3, %v1549_v18 }
 0x3a9   :  { %4088 = vmatprep.mubr.msk.f32.mxu1 %vm4411_vm1, %v4410_v8 }
 0x3cf   :  { %v1496_v21 = vpop.xlane.xlu0 %1495  ;;  %v1409_v22 = vpop.xlane.xlu1 %1408 }
 0x3d0   :  { %4332 = vrcp.f32 %v1496_v21  ;;  %v1441_v23 = vsub.f32 %v4652_v60, %v1409_v22  ;;  %v2429_v22 = vrot.slane %v1563_v57, 4 }
 0x3d1   :  { %4334 = vrcp.f32 %v1499_v19 }
 0x3d2   :  { %v1464_v24 = vmul.f32 1.442695, %v1441_v23 }
 0x3d3   :  { %v2040_v25 = vpop.permute.xlu0 %2039 }
 0x3d4   :  { %4336 = vpow2.f32 %v1464_v24  ;;  %4087 = vmatpush3.msra.mxu1 %v2040_v25 }
 0x3d5   :  { %4091 = vmatprep.subr.mxu1 %v4410_v8 }
 0x3da   :  { %v4333_v26 = vpop.eup %4332 }
 0x3db   :  { %v1550_v27 = vmul.f32 %v4333_v26, %v4697_v46  ;;  %v4335_v28 = vpop.eup %4334 }
 0x3dc   :  { %v1551_v60 = vmul.f32 %v4335_v28, %v4690_v43 }
 0x3dd   :  { %4089 = vmatmul.mubr.msk.f32.vlgmr.msra.gmra.mrb[28].mxu1 %vm1385_vm3, %v1550_v27 }
 0x3de   :  { %v4732_v29 = vpop.eup %4336  ;;  %4092 = vmatpush3.msra.mxu1 %v2116_v20  ;;  %4093 = vmatprep.mubr.msk.f32.mxu1 %vm4411_vm1, %v4410_v8 }
 0x3df   :  { %v1503_v30 = vsel %vm1385_vm3, %v4732_v29, 0.0  ;;  %4101 = vmatprep.subr.mxu1 %v4410_v8 }
 0x3e0   :  { %1504 = vadd.xlane.f32.xlu0 %v1503_v30 }
 0x3e1   :  { %4094 = vmatmul.mubr.msk.f32.vlgmr.msra.gmra.mrb[30].mxu1 %vm1385_vm3, %v1551_v60 }
 0x3e2   :  { %4103 = vmatprep.mubr.msk.f32.mxu1 %vm4411_vm1, %v4410_v8 }
 0x404   :  { %v1406_v33 = vpop.xlane.xlu0 %1405 }
 0x405   :  { %v1440_v34 = vsub.f32 %v4662_v2, %v1406_v33 }
 0x407   :  { %v1462_v35 = vmul.f32 1.442695, %v1440_v34 }
 0x408   :  { %v1412_v36 = vpop.xlane.xlu0 %1411 }
 0x409   :  { %4338 = vpow2.f32 %v1462_v35  ;;  %v1442_v37 = vsub.f32 %v4666_v6, %v1412_v36 }
 0x40b   :  { %v1466_v38 = vmul.f32 1.442695, %v1442_v37 }
 0x40c   :  { %v1415_v39 = vpop.xlane.xlu0 %1414 }
 0x40d   :  { %4340 = vpow2.f32 %v1466_v38  ;;  %v1443_v40 = vsub.f32 %v4654_v62, %v1415_v39 }
 0x40f   :  { %v1468_v41 = vmul.f32 1.442695, %v1443_v40 }
 0x411   :  { %4342 = vpow2.f32 %v1468_v41 }
 0x413   :  { %v4339_v42 = vpop.eup %4338 }
 0x414   :  { %v1500_v43 = vsel %vm1385_vm3, %v4339_v42, 0.0 }
 0x415   :  { %1501 = vadd.xlane.f32.xlu1 %v1500_v43 }
 0x417   :  { %v4341_v15 = vpop.eup %4340 }
 0x418   :  { %v1506_v44 = vsel %vm1385_vm3, %v4341_v15, 0.0 }
 0x419   :  { %1507 = vadd.xlane.f32.xlu1 %v1506_v44  ;;  %v1428_v44 = vsel %vm1385_vm3, %v4722_v16, -inf }
 0x41b   :  { %v4754_v2 = vpop.eup %4342 }
 0x41c   :  { %v1509_v6 = vsel %vm1385_vm3, %v4754_v2, 0.0 }
 0x41d   :  { %1510 = vadd.xlane.f32.xlu0 %v1509_v6 }
 0x42a   :  { %2277 = vrot.lane.b32.xlu1 %v4527_v12, %s4430_s29 }
 0x42e   :  { %2515 = vrot.lane.b32.xlu1 %v4527_v12, %s4431_s30 }
 0x432   :  { %2591 = vrot.lane.b32.xlu1 %v4531_v13, %s4431_s30 }
 0x433   :  { %2353 = vrot.lane.b32.xlu0 %v4531_v13, %s4430_s29 }
 0x439   :  { %v4762_v62 = vpop.f32.mrb[22].mxu1 }
 0x43a   :  { %v4055_v45 = vpop.f32.mrb[23].mxu1  ;;  %v1638_v46 = vpop.f32.mrb[10].mxu0 }
 0x43b   :  { %v4060_v47 = vpop.f32.mrb[11].mxu0 }
 0x43e   :  { %v1714_v48 = vpop.f32.mrb[24].mxu1 }
 0x43f   :  { %v4065_v49 = vpop.f32.mrb[25].mxu1 }
 0x442   :  { %v1790_v50 = vpop.f32.mrb[12].mxu0 }
 0x443   :  { %v4070_v51 = vpop.f32.mrb[13].mxu0  ;;  %4078 = vmatprep.mubr.msk.f32.mxu0 %vm139_vm2, %v1790_v50 }
 0x452   :  { %1417 = vmax.xlane.f32.xlu0 %v1416_v52 }
 0x456   :  { %1423 = vmax.xlane.f32.xlu0 %v1422_v53  ;;  %1420 = vmax.xlane.f32.xlu1 %v1419_v54 }
 0x45a   :  { %1426 = vmax.xlane.f32.xlu0 %v1425_v55 }
 0x46d   :  { %v1505_v61 = vpop.xlane.xlu0 %1504 }
 0x47b   :  { %v1866_v56 = vpop.f32.mrb[26].mxu1 }
 0x47c   :  { %v4075_v58 = vpop.f32.mrb[27].mxu1  ;;  %4079 = vmatmul.mubr.msk.f32.vlgmr.msra.gmra.mrb[14].mxu0 %vm139_vm2, %v1866_v56 }
 0x47d   :  { %4083 = vmatprep.mubr.msk.f32.mxu0 %vm139_vm2, %v1638_v46  ;;  %4082 = vmatpush3.msk.msra.mxu0 %vm1878_vm4, %v1562_v31 }
 0x47e   :  { %4096 = vmatprep.subr.msk.mxu0 %vm1878_vm4, %v1563_v57 }
 0x484   :  { %4084 = vmatmul.mubr.msk.f32.vlgmr.msra.gmra.mrb[14].mxu0 %vm139_vm2, %v1714_v48 }
 0x485   :  { %4097 = vmatpush3.msk.msra.mxu0 %vm1878_vm4, %v1563_v57 }
 0x486   :  { %4106 = vmatprep.subr.mxu0 %v4410_v8 }
 0x4a2   :  { %v1502_v59 = vpop.xlane.xlu1 %1501 }
 0x4a3   :  { %4344 = vrcp.f32 %v1502_v59 }
 0x4a6   :  { %v1508_v63 = vpop.xlane.xlu1 %1507 }
 0x4a7   :  { %4346 = vrcp.f32 %v1508_v63 }
 0x4a8   :  { %4348 = vrcp.f32 %v1505_v61 }
 0x4aa   :  { %v2278_v1 = vpop.permute.xlu1 %2277  ;;  %v1511_v3 = vpop.xlane.xlu0 %1510 }
 0x4ab   :  { %4350 = vrcp.f32 %v1511_v3  ;;  %4102 = vmatpush3.msra.mxu1 %v2278_v1 }
 0x4ac   :  { %4116 = vmatprep.subr.mxu1 %v4410_v8 }
 0x4ad   :  { %v4345_v5 = vpop.eup %4344 }
 0x4ae   :  { %v1552_v7 = vmul.f32 %v4345_v5, %v4339_v42  ;;  %v2516_v10 = vpop.permute.xlu1 %2515  ;;  %v2354_v25 = vpop.permute.xlu0 %2353 }
 0x4b0   :  { %v2111_v17 = vpop.f32.mrb[28].mxu1  ;;  %4104 = vmatmul.mubr.msk.f32.vlgmr.msra.gmra.mrb[32].mxu1 %vm1385_vm3, %v1552_v7 }
 0x4b1   :  { %v4347_v14 = vpop.eup %4346  ;;  %4117 = vmatpush3.msra.mxu1 %v2516_v10  ;;  %v4090_v18 = vpop.f32.mrb[29].mxu1  ;;  %4098 = vmatprep.mubr.msk.f32.mxu0 %vm139_vm2, %v2111_v17 }
 0x4b2   :  { %v1554_v19 = vmul.f32 %v4347_v14, %v4341_v15  ;;  %v2592_v20 = vpop.permute.xlu1 %2591  ;;  %4118 = vmatprep.mubr.msk.f32.mxu1 %vm4411_vm1, %v4410_v8  ;;  %4121 = vmatprep.subr.mxu1 %v4410_v8  ;;  %v4349_v21 = vpop.eup %4348  ;;  %v1564_v15 = vld [vmem:[%s5001_s3 + $0x10] sm:$0xff] }
 0x4b3   :  { %v1553_v28 = vmul.f32 %v4349_v21, %v4732_v29  ;;  %v2905_v5 = vrot.slane %v1564_v15, 4 }
 0x4b4   :  { %v2187_v23 = vpop.f32.mrb[30].mxu1  ;;  %4119 = vmatmul.mubr.msk.f32.vlgmr.msra.gmra.mrb[34].mxu1 %vm1385_vm3, %v1554_v19 }
 0x4b5   :  { %v4351_v24 = vpop.eup %4350  ;;  %4122 = vmatpush3.msra.mxu1 %v2592_v20  ;;  %v4095_v26 = vpop.f32.mrb[31].mxu1  ;;  %4099 = vmatmul.mubr.msk.f32.vlgmr.msra.gmra.mrb[14].mxu0 %vm139_vm2, %v2187_v23 }
 0x4b6   :  { %v1555_v27 = vmul.f32 %v4351_v24, %v4754_v2  ;;  %4107 = vmatpush3.msra.mxu0 %v2354_v25  ;;  %4123 = vmatprep.mubr.msk.f32.mxu1 %vm4411_vm1, %v4410_v8  ;;  %v1431_v2 = vsel %vm1385_vm3, %v4762_v62, -inf }
 0x4b7   :  { %4108 = vmatprep.mubr.msk.f32.mxu0 %vm4411_vm1, %v4410_v8  ;;  %4131 = vmatprep.subr.mxu1 %v4410_v8 }
 0x4b8   :  { %4124 = vmatmul.mubr.msk.f32.vlgmr.msra.gmra.mrb[36].mxu1 %vm1385_vm3, %v1555_v27  ;;  %4111 = vmatprep.subr.msk.mxu0 %vm1878_vm4, %v2429_v22 }
 0x4b9   :  { %4109 = vmatmul.mubr.msk.f32.vlgmr.msra.gmra.mrb[16].mxu0 %vm1385_vm3, %v1553_v28  ;;  %4133 = vmatprep.mubr.msk.f32.mxu1 %vm4411_vm1, %v4410_v8 }
 0x4ba   :  { %4112 = vmatpush3.msk.msra.mxu0 %vm1878_vm4, %v2429_v22 }
 0x4bb   :  { %4126 = vmatprep.subr.msk.mxu0 %vm1878_vm4, %v1564_v15 }
 0x4df   :  { %v1418_v60 = vpop.xlane.xlu0 %1417 }
 0x4e0   :  { %v1444_v30 = vsub.f32 %v4668_v9, %v1418_v60 }
 0x4e2   :  { %v1470_v29 = vmul.f32 1.442695, %v1444_v30 }
 0x4e3   :  { %v1424_v31 = vpop.xlane.xlu0 %1423  ;;  %v1421_v32 = vpop.xlane.xlu1 %1420 }
 0x4e4   :  { %4352 = vpow2.f32 %v1470_v29  ;;  %v1446_v33 = vsub.f32 %v4670_v11, %v1424_v31  ;;  %v1445_v34 = vsub.f32 %v4656_v0, %v1421_v32 }
 0x4e6   :  { %v1474_v35 = vmul.f32 1.442695, %v1446_v33  ;;  %v1472_v36 = vmul.f32 1.442695, %v1445_v34 }
 0x4e7   :  { %v1427_v37 = vpop.xlane.xlu0 %1426 }
 0x4e8   :  { %4354 = vpow2.f32 %v1474_v35  ;;  %v1447_v38 = vsub.f32 %v4664_v4, %v1427_v37 }
 0x4e9   :  { %4356 = vpow2.f32 %v1472_v36 }
 0x4ea   :  { %v1476_v39 = vmul.f32 1.442695, %v1447_v38 }
 0x4ec   :  { %4358 = vpow2.f32 %v1476_v39 }
 0x4ee   :  { %v4353_v40 = vpop.eup %4352 }
 0x4ef   :  { %v1512_v9 = vsel %vm1385_vm3, %v4353_v40, 0.0 }
 0x4f0   :  { %1513 = vadd.xlane.f32.xlu1 %v1512_v9 }
 0x4f2   :  { %v4355_v41 = vpop.eup %4354 }
 0x4f3   :  { %v4809_v42 = vpop.eup %4356  ;;  %v1518_v11 = vsel %vm1385_vm3, %v4355_v41, 0.0 }
 0x4f4   :  { %1519 = vadd.xlane.f32.xlu1 %v1518_v11  ;;  %v1515_v0 = vsel %vm1385_vm3, %v4809_v42, 0.0 }
 0x4f5   :  { %1516 = vadd.xlane.f32.xlu0 %v1515_v0  ;;  %v3840_v0 = vld [vmem:[%s5002_s4] ss:$0 sm:$0xff] }
 0x4f6   :  { %v4359_v43 = vpop.eup %4358 }
 0x4f7   :  { %v1521_v4 = vsel %vm1385_vm3, %v4359_v43, 0.0 }
 0x4f9   :  { %1522 = vadd.xlane.f32.xlu0 %v1521_v4 }
 0x505   :  { %2753 = vrot.lane.b32.xlu1 %v4527_v12, %s4432_s2 }
 0x509   :  { %2991 = vrot.lane.b32.xlu1 %v4527_v12, %s4433_s14 }
 0x50d   :  { %3067 = vrot.lane.b32.xlu1 %v4531_v13, %s4433_s14 }
 0x50f   :  { %2829 = vrot.lane.b32.xlu0 %v4531_v13, %s4432_s2 }
 0x52e   :  { %1429 = vmax.xlane.f32.xlu0 %v1428_v44  ;;  %v4384_v44 = vld [vmem:[%s4998_s0 + $0x8] sm:$0xff] }
 0x531   :  { %1432 = vmax.xlane.f32.xlu1 %v1431_v2 }
 0x542   :  { %3229 = vrot.lane.b32.xlu1 %v4527_v12, %s4434_s17 }
 0x57d   :  { %v1514_v6 = vpop.xlane.xlu1 %1513 }
 0x57e   :  { %4360 = vrcp.f32 %v1514_v6  ;;  %v4385_v6 = vld [vmem:[%s4998_s0] sm:$0xff] }
 0x581   :  { %v1520_v45 = vpop.xlane.xlu1 %1519 }
 0x582   :  { %4362 = vrcp.f32 %v1520_v45  ;;  %v1517_v46 = vpop.xlane.xlu0 %1516 }
 0x583   :  { %v2349_v47 = vpop.f32.mrb[32].mxu1 }
 0x584   :  { %v4105_v48 = vpop.f32.mrb[33].mxu1  ;;  %4113 = vmatprep.mubr.msk.f32.mxu0 %vm139_vm2, %v2349_v47 }
 0x585   :  { %v2754_v49 = vpop.permute.xlu1 %2753 }
 0x586   :  { %v1523_v50 = vpop.xlane.xlu0 %1522  ;;  %4132 = vmatpush3.msra.mxu1 %v2754_v49 }
 0x587   :  { %4364 = vrcp.f32 %v1523_v50  ;;  %v2587_v51 = vpop.f32.mrb[34].mxu1  ;;  %4146 = vmatprep.subr.mxu1 %v4410_v8 }
 0x588   :  { %v4361_v52 = vpop.eup %4360  ;;  %v4120_v53 = vpop.f32.mrb[35].mxu1  ;;  %4366 = vrcp.f32 %v1517_v46 }
 0x589   :  { %v1556_v54 = vmul.f32 %v4361_v52, %v4353_v40  ;;  %v2992_v12 = vpop.permute.xlu1 %2991 }
 0x58a   :  { %v2830_v10 = vpop.permute.xlu0 %2829 }
 0x58b   :  { %v2663_v55 = vpop.f32.mrb[36].mxu1  ;;  %4134 = vmatmul.mubr.msk.f32.vlgmr.msra.gmra.mrb[38].mxu1 %vm1385_vm3, %v1556_v54 }
 0x58c   :  { %v4363_v56 = vpop.eup %4362  ;;  %4147 = vmatpush3.msra.mxu1 %v2992_v12  ;;  %v2425_v57 = vpop.f32.mrb[16].mxu0  ;;  %4148 = vmatprep.mubr.msk.f32.mxu1 %vm4411_vm1, %v4410_v8 }
 0x58d   :  { %v4125_v58 = vpop.f32.mrb[37].mxu1  ;;  %v1558_v59 = vmul.f32 %v4363_v56, %v4355_v41  ;;  %v3068_v61 = vpop.permute.xlu1 %3067  ;;  %4114 = vmatmul.mubr.msk.f32.vlgmr.msra.gmra.mrb[14].mxu0 %vm139_vm2, %v2425_v57  ;;  %4151 = vmatprep.subr.mxu1 %v4410_v8  ;;  %v3523_v57 = vld [vmem:[%s5003_s5] sm:$0xff] }
 0x58e   :  { %v4110_v63 = vpop.f32.mrb[17].mxu0  ;;  %4127 = vmatpush3.msk.msra.mxu0 %vm1878_vm4, %v1564_v15  ;;  %4128 = vmatprep.mubr.msk.f32.mxu0 %vm139_vm2, %v2587_v51  ;;  %v3524_v58 = vld [vmem:[%s5003_s5 + $0x8] sm:$0xff] }
 0x58f   :  { %4149 = vmatmul.mubr.msk.f32.vlgmr.msra.gmra.mrb[40].mxu1 %vm1385_vm3, %v1558_v59  ;;  %4136 = vmatprep.subr.mxu0 %v4410_v8  ;;  %v4230_v59 = vpack.c.bf16 %v3524_v58, %v3523_v57  ;;  %v3526_v63 = vld [vmem:[%s5003_s5 + $0x18] sm:$0xff] }
 0x590   :  { %4152 = vmatpush3.msra.mxu1 %v3068_v61  ;;  %4153 = vmatprep.mubr.msk.f32.mxu1 %vm4411_vm1, %v4410_v8  ;;  %v3525_v61 = vld [vmem:[%s5003_s5 + $0x10] sm:$0xff] }
 0x591   :  { %v4365_v1 = vpop.eup %4364  ;;  %4161 = vmatprep.subr.mxu1 %v4410_v8 }
 0x592   :  { %v1559_v3 = vmul.f32 %v4365_v1, %v4359_v43  ;;  %v4367_v7 = vpop.eup %4366  ;;  %v4234_v1 = vpack.c.bf16 %v3526_v63, %v3525_v61 }
 0x593   :  { %v1557_v17 = vmul.f32 %v4367_v7, %v4809_v42  ;;  %v3619_v7 = vld [vmem:[%s5005_s7 + $0x10] sm:$0xff] }
 0x594   :  { %4154 = vmatmul.mubr.msk.f32.vlgmr.msra.gmra.mrb[42].mxu1 %vm1385_vm3, %v1559_v3  ;;  %v3617_v3 = vld [vmem:[%s5005_s7] sm:$0xff] }
 0x595   :  { %4129 = vmatmul.mubr.msk.f32.vlgmr.msra.gmra.mrb[14].mxu0 %vm139_vm2, %v2663_v55  ;;  %4163 = vmatprep.mubr.msk.f32.mxu1 %vm4411_vm1, %v4410_v8 }
 0x596   :  { %4137 = vmatpush3.msra.mxu0 %v2830_v10  ;;  %4138 = vmatprep.mubr.msk.f32.mxu0 %vm4411_vm1, %v4410_v8 }
 0x597   :  { %4141 = vmatprep.subr.msk.mxu0 %vm1878_vm4, %v2905_v5 }
 0x599   :  { %4139 = vmatmul.mubr.msk.f32.vlgmr.msra.gmra.mrb[18].mxu0 %vm1385_vm3, %v1557_v17  ;;  %v3620_v17 = vld [vmem:[%s5005_s7 + $0x18] sm:$0xff] }
 0x59a   :  { %4142 = vmatpush3.msk.msra.mxu0 %vm1878_vm4, %v2905_v5  ;;  %v3618_v5 = vld [vmem:[%s5005_s7 + $0x8] sm:$0xff] }
 0x59b   :  { %v4238_v10 = vpack.c.bf16 %v3618_v5, %v3617_v3 }
 0x5bb   :  { %v1430_v14 = vpop.xlane.xlu0 %1429 }
 0x5bc   :  { %v1448_v18 = vsub.f32 %v4722_v16, %v1430_v14  ;;  %v1565_v16 = vld [vmem:[%s5001_s3 + $0x18] sm:$0xff]  ;;  %v4242_v14 = vpack.c.bf16 %v3620_v17, %v3619_v7 }
 0x5bd   :  { %4156 = vmatprep.subr.msk.mxu0 %vm1878_vm4, %v1565_v16  ;;  %v3381_v37 = vrot.slane %v1565_v16, 4 }
 0x5be   :  { %v1478_v19 = vmul.f32 1.442695, %v1448_v18  ;;  %v1433_v20 = vpop.xlane.xlu1 %1432  ;;  %v3621_v18 = vld [vmem:[%s5005_s7 + $0x20] sm:$0xff] }
 0x5bf   :  { %v1449_v21 = vsub.f32 %v4762_v62, %v1433_v20 }
 0x5c0   :  { %4368 = vpow2.f32 %v1478_v19  ;;  %v3622_v19 = vld [vmem:[%s5005_s7 + $0x28] sm:$0xff] }
 0x5c1   :  { %v1480_v22 = vmul.f32 1.442695, %v1449_v21  ;;  %v4246_v20 = vpack.c.bf16 %v3622_v19, %v3621_v18  ;;  %v3623_v21 = vld [vmem:[%s5005_s7 + $0x30] sm:$0xff] }
 0x5c2   :  { %v3230_v23 = vpop.permute.xlu1 %3229 }
 0x5c3   :  { %4370 = vpow2.f32 %v1480_v22  ;;  %4162 = vmatpush3.msra.mxu1 %v3230_v23  ;;  %v3624_v22 = vld [vmem:[%s5005_s7 + $0x38] sm:$0xff] }
 0x5c4   :  { %4231 = vmatprep.subr.bf16.mxu1 %v4230_v59  ;;  %v4250_v23 = vpack.c.bf16 %v3624_v22, %v3623_v21 }
 0x5ca   :  { %v4369_v24 = vpop.eup %4368 }
 0x5cb   :  { %v1524_v25 = vsel %vm1385_vm3, %v4369_v24, 0.0 }
 0x5cc   :  { %1525 = vadd.xlane.f32.xlu0 %v1524_v25  ;;  %v3626_v25 = vld [vmem:[%s5005_s7 + $0x48] sm:$0xff] }
 0x5cd   :  { %v4371_v26 = vpop.eup %4370 }
 0x5ce   :  { %v1527_v27 = vsel %vm1385_vm3, %v4371_v26, 0.0 }
 0x5d0   :  { %1528 = vadd.xlane.f32.xlu0 %v1527_v27  ;;  %v3627_v27 = vld [vmem:[%s5005_s7 + $0x50] sm:$0xff] }
 0x5e6   :  { %3305 = vrot.lane.b32.xlu0 %v4531_v13, %s4434_s17 }
 0x659   :  { %v1526_v62 = vpop.xlane.xlu0 %1525 }
 0x65a   :  { %4372 = vrcp.f32 %v1526_v62 }
 0x65d   :  { %v1529_v33 = vpop.xlane.xlu0 %1528 }
 0x65e   :  { %v2825_v28 = vpop.f32.mrb[38].mxu1  ;;  %4374 = vrcp.f32 %v1529_v33 }
 0x65f   :  { %v4135_v60 = vpop.f32.mrb[39].mxu1  ;;  %4143 = vmatprep.mubr.msk.f32.mxu0 %vm139_vm2, %v2825_v28  ;;  %v3629_v28 = vld [vmem:[%s5005_s7 + $0x60] sm:$0xff] }
 0x660   :  { %v3630_v60 = vld [vmem:[%s5005_s7 + $0x68] sm:$0xff] }
 0x661   :  { %v3306_v39 = vpop.permute.xlu0 %3305 }
 0x662   :  { %v3063_v30 = vpop.f32.mrb[40].mxu1 }
 0x663   :  { %v4150_v29 = vpop.f32.mrb[41].mxu1 }
 0x664   :  { %v4373_v31 = vpop.eup %4372 }
 0x665   :  { %v1560_v32 = vmul.f32 %v4373_v31, %v4369_v24  ;;  %v3625_v24 = vld [vmem:[%s5005_s7 + $0x40] sm:$0xff] }
 0x667   :  { %v3139_v34 = vpop.f32.mrb[42].mxu1  ;;  %4164 = vmatmul.mubr.msk.f32.vlgmr.msra.gmra.mrb[44].mxu1 %vm1385_vm3, %v1560_v32 }
 0x668   :  { %v4155_v13 = vpop.f32.mrb[43].mxu1  ;;  %v4375_v38 = vpop.eup %4374  ;;  %4233 = vmatpush3.bf16.msra.mxu1 %v4230_v59 }
 0x669   :  { %v1561_v40 = vmul.f32 %v4375_v38, %v4371_v26  ;;  %4235 = vmatprep.subr.bf16.mxu1 %v4234_v1  ;;  %v4254_v26 = vpack.c.bf16 %v3626_v25, %v3625_v24 }
 0x66c   :  { %v2901_v35 = vpop.f32.mrb[18].mxu0  ;;  %4237 = vmatpush3.bf16.msra.mxu1 %v4234_v1 }
 0x66d   :  { %v4140_v36 = vpop.f32.mrb[19].mxu0  ;;  %4144 = vmatmul.mubr.msk.f32.vlgmr.msra.gmra.mrb[14].mxu0 %vm139_vm2, %v2901_v35 }
 0x66e   :  { %4157 = vmatpush3.msk.msra.mxu0 %vm1878_vm4, %v1565_v16  ;;  %4158 = vmatprep.mubr.msk.f32.mxu0 %vm139_vm2, %v3063_v30  ;;  %v3628_v16 = vld [vmem:[%s5005_s7 + $0x58] sm:$0xff]  ;;  %v4262_v30 = vpack.c.bf16 %v3630_v60, %v3629_v28  ;;  %v4955_v36 = vld [vmem:[%s5007_s9] ss:$0 sm:$0xff] }
 0x66f   :  { %4166 = vmatprep.subr.mxu0 %v4410_v8  ;;  %v4258_v62 = vpack.c.bf16 %v3628_v16, %v3627_v27 }
 0x675   :  { %4159 = vmatmul.mubr.msk.f32.vlgmr.msra.gmra.mrb[14].mxu0 %vm139_vm2, %v3139_v34 }
 0x676   :  { %4167 = vmatpush3.msra.mxu0 %v3306_v39  ;;  %4168 = vmatprep.mubr.msk.f32.mxu0 %vm4411_vm1, %v4410_v8 }
 0x677   :  { %4171 = vmatprep.subr.msk.mxu0 %vm1878_vm4, %v3381_v37 }
 0x679   :  { %4169 = vmatmul.mubr.msk.f32.vlgmr.msra.gmra.mrb[20].mxu0 %vm1385_vm3, %v1561_v40  ;;  %v3842_v40 = vld [vmem:[%s5008_s10] ss:$0 sm:$0xff] }
 0x67a   :  { %4172 = vmatpush3.msk.msra.mxu0 %vm1878_vm4, %v3381_v37 }
 0x67b   :  { %4239 = vmatprep.subr.bf16.mxu0 %v4238_v10 }
 0x73a   :  { %v3301_v9 = vpop.f32.mrb[44].mxu1 }
 0x73b   :  { %v4165_v41 = vpop.f32.mrb[45].mxu1  ;;  %4173 = vmatprep.mubr.msk.f32.mxu0 %vm139_vm2, %v3301_v9 }
 0x74c   :  { %v3377_v42 = vpop.f32.mrb[20].mxu0 }
 0x74d   :  { %v4170_v11 = vpop.f32.mrb[21].mxu0  ;;  %4174 = vmatmul.mubr.msk.f32.vlgmr.msra.gmra.mrb[14].mxu0 %vm139_vm2, %v3377_v42 }
 0x74e   :  { %4241 = vmatpush3.bf16.msra.mxu0 %v4238_v10 }
 0x74f   :  { %4243 = vmatprep.subr.bf16.mxu0 %v4242_v14 }
 0x752   :  { %4245 = vmatpush3.bf16.msra.mxu0 %v4242_v14 }
 0x753   :  { %4247 = vmatprep.subr.bf16.mxu0 %v4246_v20 }
 0x756   :  { %4249 = vmatpush3.bf16.msra.mxu0 %v4246_v20 }
 0x757   :  { %4251 = vmatprep.subr.bf16.mxu0 %v4250_v23 }
 0x75a   :  { %4253 = vmatpush3.bf16.msra.mxu0 %v4250_v23 }
 0x75b   :  { %4255 = vmatprep.subr.bf16.mxu0 %v4254_v26 }
 0x75e   :  { %4257 = vmatpush3.bf16.msra.mxu0 %v4254_v26 }
 0x75f   :  { %4259 = vmatprep.subr.bf16.mxu0 %v4258_v62 }
 0x762   :  { %4261 = vmatpush3.bf16.msra.mxu0 %v4258_v62 }
 0x763   :  { %4263 = vmatprep.subr.bf16.mxu0 %v4262_v30 }
 0x766   :  { %4265 = vmatpush3.bf16.msra.mxu0 %v4262_v30 }
 0x820   :  { %v4175_v8 = vpop.f32.mrb[14].mxu0 }
 0x821   :  { %v3475_v43 = vadd.f32 %v4175_v8, %v3840_v0  ;;  %v3456_v4 = vpop.f32.mrb[15].mxu0  ;;  %v3632_v8 = vld [vmem:[%s5005_s7 + $0x78] sm:$0xff] }
 0x822   :  { %v3474_v15 = vadd.f32 %v3840_v0, %v3456_v4  ;;  %v3631_v0 = vld [vmem:[%s5005_s7 + $0x70] sm:$0xff]  ;;  %v3843_v4 = vld [vmem:[%s5004_s6] ss:$0 sm:$0xff]  ;;  %s4435_s6 = smov [#allocation2]  }
 0x823   :  { %v3479_v2 = vadd.f32 %v4384_v44, %v3475_v43  ;;  %v4266_v43 = vpack.c.bf16 %v3632_v8, %v3631_v0  ;;  %s3754_s7 = sshll.u32 %s4435_s6, 4  ;;  %s3755_s7 = int_to_ptr.vmem [resolvable:$true] %s3754_s7 }
 0x824   :  { %v3478_v45 = vadd.f32 %v4385_v6, %v3474_v15  ;;  %p4391_p1 = scmp.lt.s32.totalorder %s3755_s7, %s3755_s7 }
 0x825   :  { %v3483_v46 = vsel %vm52_vm0, %v3479_v2, 0.0  ;;  %4267 = vmatprep.subr.bf16.mxu0 %v4266_v43 }
 0x826   :  { %3484 = vadd.xlane.f32.xlu0 %v3483_v46  ;;  %v3480_v47 = vsel %vm52_vm0, %v3478_v45, 0.0  ;;  %4269 = vmatpush3.bf16.msra.mxu0 %v4266_v43 }
 0x827   :  { %3481 = vadd.xlane.f32.xlu1 %v3480_v47  ;;  %v3846_v47 = vld [vmem:[%s5006_s8] ss:$0 sm:$0xff]  ;;  %s4386_s8 = scalar_lea.vmem %s3755_s7, 256 }
 0x828   :  { %p4387_p0 = scmp.ne.s32.totalorder %s3755_s7, %s4386_s8  ;;  %p4392_p2 = scmp.lt.s32.totalorder %s4386_s8, %s4386_s8 }
 0x82a   :  { %p4393_p3 = por %p4392_p2, %p4391_p1 }
 0x82c   :  { %p4394_p4 = pnand %p4393_p3, %p4387_p0 }
 0x8b3   :  { %v3485_v48 = vpop.xlane.xlu0 %3484 }
 0x8b4   :  { %v3488_v49 = vmul.f32 0.03125, %v3485_v48  ;;  %v3482_v50 = vpop.xlane.xlu1 %3481 }
 0x8b5   :  { %v3487_v51 = vmul.f32 0.03125, %v3482_v50 }
 0x8b6   :  { %v4888_v52 = vsub.f32 %v3479_v2, %v3488_v49 }
 0x8b7   :  { %v4890_v53 = vsub.f32 %v3478_v45, %v3487_v51 }
 0x8b8   :  { %v3492_v54 = vmul.f32 %v4888_v52, %v4888_v52 }
 0x8b9   :  { %v3491_v12 = vmul.f32 %v4890_v53, %v4890_v53 }
 0x8ba   :  { %v3496_v55 = vsel %vm52_vm0, %v3492_v54, 0.0 }
 0x8bb   :  { %3497 = vadd.xlane.f32.xlu0 %v3496_v55  ;;  %v3493_v56 = vsel %vm52_vm0, %v3491_v12, 0.0 }
 0x8bc   :  { %3494 = vadd.xlane.f32.xlu1 %v3493_v56 }
 0x948   :  { %v3498_v29 = vpop.xlane.xlu0 %3497 }
 0x949   :  { %v3500_v31 = vmul.f32 0.03125, %v3498_v29  ;;  %v3495_v32 = vpop.xlane.xlu1 %3494 }
 0x94a   :  { %v3499_v33 = vmul.f32 0.03125, %v3495_v32 }
 0x94b   :  { %v3502_v34 = vadd.f32 1e-05, %v3500_v31 }
 0x94c   :  { %v3501_v13 = vadd.f32 1e-05, %v3499_v33 }
 0x94d   :  { %4376 = vrsqrt.f32 %v3502_v34 }
 0x94e   :  { %4378 = vrsqrt.f32 %v3501_v13 }
 0x957   :  { %v4377_v35 = vpop.eup %4376 }
 0x958   :  { %v4379_v37 = vpop.eup %4378  ;;  %v3506_v38 = vmul.f32 %v4377_v35, %v4888_v52 }
 0x959   :  { %v3505_v39 = vmul.f32 %v4379_v37, %v4890_v53 }
 0x95a   :  { %v3514_v9 = vmul.f32 %v4955_v36, %v3506_v38 }
 0x95b   :  { %v3513_v41 = vmul.f32 %v4955_v36, %v3505_v39 }
 0x95c   :  { %v3522_v11 = vadd.f32 %v3842_v40, %v3514_v9 }
 0x95d   :  { %v3521_v42 = vadd.f32 %v3842_v40, %v3513_v41 }
 0x95f   :  { %4184 = vmatprep.mubr.msk.f32.mxu1 %vm52_vm0, %v3521_v42 }
 0x960   :  { %4185 = vmatmul.mubr.msk.f32.vlgmr.msra.gmra.mrb[46].mxu1 %vm52_vm0, %v3522_v11 }
 0xa33   :  { %v4186_v15 = vpop.f32.mrb[46].mxu1 }
 0xa34   :  { %v3612_v44 = vadd.f32 %v4186_v15, %v3843_v4  ;;  %v3606_v2 = vpop.f32.mrb[47].mxu1 }
 0xa35   :  { %v3607_v6 = vadd.f32 %v3843_v4, %v3606_v2 }
 0xa36   :  { %v3616_v46 = vmax.f32 %v3612_v44, 0.0 }
 0xa37   :  { %v3615_v45 = vmax.f32 %v3607_v6, 0.0 }
 0xa39   :  { %4219 = vmatprep.mubr.f32.mxu0 %v3615_v45 }
 0xa3a   :  { %4220 = vmatmul.mubr.f32.vlgmr.msra.gmra.mrb[22].mxu0 %v3616_v46 }
 0xb0d   :  { %v4221_v48 = vpop.f32.mrb[22].mxu0 }
 0xb0e   :  { %v3712_v49 = vadd.f32 %v4221_v48, %v3846_v47  ;;  %v3706_v50 = vpop.f32.mrb[23].mxu0 }
 0xb0f   :  { %v3707_v51 = vadd.f32 %v3846_v47, %v3706_v50 }
 0xb10   :  { %v3716_v52 = vadd.f32 %v3712_v49, %v3522_v11 }
 0xb11   :  { %v3715_v53 = vadd.f32 %v3707_v51, %v3521_v42 }
 0xb12   :  { %v3720_v54 = vsel %vm52_vm0, %v3716_v52, 0.0 }
 0xb13   :  { %3721 = vadd.xlane.f32.xlu0 %v3720_v54  ;;  %v3717_v12 = vsel %vm52_vm0, %v3715_v53, 0.0 }
 0xb14   :  { %3718 = vadd.xlane.f32.xlu1 %v3717_v12 }
 0xba0   :  { %v3722_v55 = vpop.xlane.xlu0 %3721 }
 0xba1   :  { %v3724_v56 = vmul.f32 0.03125, %v3722_v55  ;;  %v3719_v57 = vpop.xlane.xlu1 %3718 }
 0xba2   :  { %v3723_v58 = vmul.f32 0.03125, %v3719_v57 }
 0xba3   :  { %v3726_v59 = vsub.f32 %v3716_v52, %v3724_v56 }
 0xba4   :  { %v3725_v61 = vsub.f32 %v3715_v53, %v3723_v58 }
 0xba5   :  { %v3728_v63 = vmul.f32 %v3726_v59, %v3726_v59 }
 0xba6   :  { %v3727_v1 = vmul.f32 %v3725_v61, %v3725_v61 }
 0xba7   :  { %v3732_v3 = vsel %vm52_vm0, %v3728_v63, 0.0 }
 0xba8   :  { %3733 = vadd.xlane.f32.xlu0 %v3732_v3  ;;  %v3729_v5 = vsel %vm52_vm0, %v3727_v1, 0.0 }
 0xba9   :  { %3730 = vadd.xlane.f32.xlu1 %v3729_v5 }
 0xc35   :  { %v3734_v7 = vpop.xlane.xlu0 %3733 }
 0xc36   :  { %v3736_v10 = vmul.f32 0.03125, %v3734_v7  ;;  %v3731_v17 = vpop.xlane.xlu1 %3730 }
 0xc37   :  { %v3735_v14 = vmul.f32 0.03125, %v3731_v17 }
 0xc38   :  { %v3738_v18 = vadd.f32 1e-05, %v3736_v10 }
 0xc39   :  { %v3737_v19 = vadd.f32 1e-05, %v3735_v14 }
 0xc3a   :  { %4380 = vrsqrt.f32 %v3738_v18 }
 0xc3b   :  { %4382 = vrsqrt.f32 %v3737_v19 }
 0xc44   :  { %v4381_v20 = vpop.eup %4380 }
 0xc45   :  { %v4383_v21 = vpop.eup %4382  ;;  %v3742_v22 = vmul.f32 %v4381_v20, %v3726_v59 }
 0xc46   :  { %v3741_v23 = vmul.f32 %v4383_v21, %v3725_v61 }
 0xc47   :  { %v3744_v24 = vmul.f32 %v4955_v36, %v3742_v22 }
 0xc48   :  { %v3743_v25 = vmul.f32 %v4955_v36, %v3741_v23 }
 0xc49   :  { %v3746_v26 = vadd.f32 %v3842_v40, %v3744_v24 }
 0xc4a   :  { %v3745_v27 = vadd.f32 %v3842_v40, %v3743_v25 }
 0xc4b   :  { %3748 = vst.msk [vmem:[#allocation2 + $0x8] sm:$0xff] %vm52_vm0, %v3746_v26 }
 0xc4c   :  { %3747 = vst.msk [vmem:[#allocation2] sm:$0xff] %vm52_vm0, %v3745_v27 }
 0xc4d   :  { %4397 = shalt.err (!%p4394_p4)
}
 0xc4e   :  { %s4398_s23 = scalar_lea.hbm %s5009_s11, 256 }
 0xc4f   :  { %p4399_p5 = scmp.ne.s32.totalorder %s5009_s11, %s4398_s23  ;;  %p4402_p6 = scmp.lt.u32.totalorder %s4398_s23, %s5009_s11 }
 0xc51   :  { %p4404_p7 = pnand %p4402_p6, %p4399_p5 }
 0xc53   :  { %4407 = shalt.err (!%p4404_p7)
}
 0xc54   :  { %s4436_s26 = smov 128   ;;  %s4437_s27 = smov 8  }
 0xc55   :  { %3760 = dma.vmem_to_hbm [thread:$0]  %s3755_s7, 256, %s5009_s11, [#allocation3], %s4436_s26, %s4436_s26, %s4437_s27  }
 0xc56   :  { %4408 = dma.done.wait [#allocation3], 256  }
 0xc57   :  { %4409 = vsyncadd [#allocation3], 4294967040 }
 0xc58   :  { %3764 = vsyncpa [#allocation3], 1 }

</bundles_post_ra>
